<compile_context>
chip_gen: v7x
topology: tpu7x:2x2x1
jax: 0.10.0
libtpu: 0.0.40
codegen_flags: <defaults>
</compile_context>

<pallas_src>
import functools

import jax
import jax.numpy as jnp
from jax.experimental import pallas as pl
from jax.experimental.pallas import tpu as pltpu


def mlp_kernel(x_ref, w1_ref, b1_ref, w2_ref, b2_ref, w3_ref, b3_ref, o_ref):
    """Fused 3-layer MLP: bf16 MXU matmuls with f32 accumulation, f32 bias+ReLU."""
    # In-kernel downcast: x is DMA'd as f32, cast to bf16 right before the MXU.
    x = x_ref[...].astype(jnp.bfloat16)

    # layer 1: Linear + ReLU (f32 accumulate, f32 elementwise on the VPU)
    h1 = jnp.dot(x, w1_ref[...], preferred_element_type=jnp.float32)
    h1 = jnp.maximum(h1 + b1_ref[...], 0.0)

    # layer 2: Linear + ReLU (single downcast of activations for the MXU)
    h2 = jnp.dot(h1.astype(jnp.bfloat16), w2_ref[...],
                 preferred_element_type=jnp.float32)
    h2 = jnp.maximum(h2 + b2_ref[...], 0.0)

    # layer 3: Linear (true D_out width; masked store is negligible here)
    out = jnp.dot(h2.astype(jnp.bfloat16), w3_ref[...],
                  preferred_element_type=jnp.float32)
    o_ref[...] = (out + b3_ref[...]).astype(o_ref.dtype)


def _num_tensorcores():
    """2 TensorCores per chip on v7x, 1 on v5e/v6e. Safe fallback: 1."""
    try:
        kind = jax.devices()[0].device_kind.lower()
    except Exception:
        return 1
    return 2 if "v7" in kind else 1


def _pick_batch_tile(B):
    """grid=1 on single-TC chips; even 2-step grid on v7x so both TCs get work."""
    if _num_tensorcores() >= 2 and B % 2 == 0 and (B // 2) % 8 == 0:
        return B // 2
    return B


def pack_params(params):
    """One-time packing (outside the per-call path): bf16 weights, f32 biases."""
    return {
        "w1": params["w1"].astype(jnp.bfloat16),
        "w2": params["w2"].astype(jnp.bfloat16),
        "w3": params["w3"].astype(jnp.bfloat16),
        "b1": params["b1"].astype(jnp.float32),
        "b2": params["b2"].astype(jnp.float32),
        "b3": params["b3"].astype(jnp.float32),
    }


def hybrid_model_forward(x, packed, *, tb=None):
    """x: [B, input_dim] f32. packed: output of pack_params (weights [in, out])."""
    B, D_in = x.shape
    H = packed["w1"].shape[1]
    D_out = packed["w3"].shape[1]

    if tb is None:
        tb = _pick_batch_tile(B)
    assert B % tb == 0, "batch must be divisible by the batch tile"
    assert tb == B or tb % 8 == 0, "batch tile must be a multiple of 8"

    flops = 2 * B * (D_in * H + H * H + H * D_out)
    bytes_accessed = (
        B * D_in * 4                                                     # f32 x in
        + (packed["w1"].size + packed["w2"].size + packed["w3"].size) * 2  # bf16 weights
        + (packed["b1"].size + packed["b2"].size + packed["b3"].size) * 4  # f32 biases
        + B * D_out * 4                                                  # f32 out
    )

    # Weights/biases: constant index_maps -> resident across the grid; single-buffer.
    resident = functools.partial(pl.BlockSpec, pipeline_mode=pl.Buffered(1))

    out = pl.pallas_call(
        mlp_kernel,
        out_shape=jax.ShapeDtypeStruct((B, D_out), jnp.float32),
        grid_spec=pltpu.PrefetchScalarGridSpec(
            num_scalar_prefetch=0,
            grid=(B // tb,),
            in_specs=[
                pl.BlockSpec((tb, D_in), lambda i: (i, 0)),   # x tile over batch (f32)
                resident((D_in, H), lambda i: (0, 0)),        # w1
                resident((1, H), lambda i: (0, 0)),           # b1
                resident((H, H), lambda i: (0, 0)),           # w2
                resident((1, H), lambda i: (0, 0)),           # b2
                resident((H, D_out), lambda i: (0, 0)),       # w3
                resident((1, D_out), lambda i: (0, 0)),       # b3
            ],
            out_specs=pl.BlockSpec((tb, D_out), lambda i: (i, 0)),
        ),
        compiler_params=pltpu.CompilerParams(
            dimension_semantics=("parallel",),
            vmem_limit_bytes=16 * 1024 * 1024,
        ),
        cost_estimate=pl.CostEstimate(
            flops=flops, transcendentals=0, bytes_accessed=bytes_accessed
        ),
    )(x, packed["w1"], packed["b1"], packed["w2"], packed["b2"],
      packed["w3"], packed["b3"])
    return out


def init_params(key, input_dim, hidden_dim, output_dim):
    """Deterministic init mimicking torch.nn.Linear (uniform +/- 1/sqrt(fan_in))."""
    def linear_init(k, fan_in, fan_out):
        kw, kb = jax.random.split(k)
        bound = 1.0 / jnp.sqrt(fan_in)
        w = jax.random.uniform(kw, (fan_in, fan_out), jnp.float32, -bound, bound)
        b = jax.random.uniform(kb, (1, fan_out), jnp.float32, -bound, bound)
        return w, b

    k1, k2, k3 = jax.random.split(key, 3)
    w1, b1 = linear_init(k1, input_dim, hidden_dim)
    w2, b2 = linear_init(k2, hidden_dim, hidden_dim)
    w3, b3 = linear_init(k3, hidden_dim, output_dim)
    return {"w1": w1, "b1": b1, "w2": w2, "b2": b2, "w3": w3, "b3": b3}


def reference_forward(x, p):
    h1 = jnp.maximum(x @ p["w1"] + p["b1"], 0.0)
    h2 = jnp.maximum(h1 @ p["w2"] + p["b2"], 0.0)
    return h2 @ p["w3"] + p["b3"]


if __name__ == "__main__":
    # Small shapes consistent with the module's MLP forward.
    batch, input_dim, hidden_dim, output_dim = 512, 256, 128, 32

    key = jax.random.PRNGKey(0)
    kx, kp = jax.random.split(key)
    x = jax.random.normal(kx, (batch, input_dim), jnp.float32)
    params = init_params(kp, input_dim, hidden_dim, output_dim)

    # Pack once (cast to bf16 weights / f32 biases) — not part of the per-call path.
    packed = jax.tree_util.tree_map(jax.block_until_ready, pack_params(params))

    fwd = jax.jit(hybrid_model_forward)
    out = jax.block_until_ready(fwd(x, packed))

    ref = reference_forward(x, params)
    assert out.shape == (batch, output_dim)
    # bf16 matmul operands (f32 accumulation) -> bf16-appropriate tolerance.
    assert jnp.allclose(out, ref, atol=3e-2, rtol=3e-2), "mismatch vs JAX reference"

    print("KERNEL_OK")
</pallas_src>

<mosaic_0001>
module attributes {stable_mosaic.version = 11 : i64} {
  func.func @mlp_kernel(%arg0: i32, %arg1: memref<512x256xf32, #tpu.memory_space<vmem>>, %arg2: memref<256x128xbf16, #tpu.memory_space<vmem>>, %arg3: memref<1x128xf32, #tpu.memory_space<vmem>>, %arg4: memref<128x128xbf16, #tpu.memory_space<vmem>>, %arg5: memref<1x128xf32, #tpu.memory_space<vmem>>, %arg6: memref<128x32xbf16, #tpu.memory_space<vmem>>, %arg7: memref<1x32xf32, #tpu.memory_space<vmem>>, %arg8: memref<512x32xf32, #tpu.memory_space<vmem>>) attributes {dimension_semantics = [#tpu.dimension_semantics<parallel>], iteration_bounds = array<i64: 1>, scalar_prefetch = 0 : i64, scratch_operands = 0 : i64, tpu.core_type = #tpu.core_type<tc>, window_params = [{transform_indices = @transform_0, window_bounds = array<i64: 512, 256>}, {pipeline_mode = #tpu.pipeline_mode<synchronous>, transform_indices = @transform_1, window_bounds = array<i64: 256, 128>}, {pipeline_mode = #tpu.pipeline_mode<synchronous>, transform_indices = @transform_2, window_bounds = array<i64: 1, 128>}, {pipeline_mode = #tpu.pipeline_mode<synchronous>, transform_indices = @transform_3, window_bounds = array<i64: 128, 128>}, {pipeline_mode = #tpu.pipeline_mode<synchronous>, transform_indices = @transform_4, window_bounds = array<i64: 1, 128>}, {pipeline_mode = #tpu.pipeline_mode<synchronous>, transform_indices = @transform_5, window_bounds = array<i64: 128, 32>}, {pipeline_mode = #tpu.pipeline_mode<synchronous>, transform_indices = @transform_6, window_bounds = array<i64: 1, 32>}, {transform_indices = @transform_7, window_bounds = array<i64: 512, 32>}]} {
    %c0 = arith.constant 0 : index
    %c0_0 = arith.constant 0 : index
    %0 = vector.load %arg1[%c0, %c0_0] : memref<512x256xf32, #tpu.memory_space<vmem>>, vector<512x256xf32>
    %1 = arith.truncf %0 : vector<512x256xf32> to vector<512x256xbf16>
    %c0_1 = arith.constant 0 : index
    %c0_2 = arith.constant 0 : index
    %2 = vector.load %arg2[%c0_1, %c0_2] : memref<256x128xbf16, #tpu.memory_space<vmem>>, vector<256x128xbf16>
    %cst = arith.constant dense<0.000000e+00> : vector<512x128xf32>
    %3 = tpu.matmul %1, %2, %cst {dimension_numbers = #tpu.dot_dimension_numbers<[1], [0], [0], [1], [0, 0, 1, 1], [], []>} : vector<512x256xbf16>, vector<256x128xbf16>, vector<512x128xf32> -> vector<512x128xf32>
    %c0_3 = arith.constant 0 : index
    %c0_4 = arith.constant 0 : index
    %4 = vector.load %arg3[%c0_3, %c0_4] : memref<1x128xf32, #tpu.memory_space<vmem>>, vector<1x128xf32>
    %5 = vector.broadcast %4 : vector<1x128xf32> to vector<512x128xf32>
    %6 = arith.addf %3, %5 : vector<512x128xf32>
    %cst_5 = arith.constant 0.000000e+00 : f32
    %7 = vector.broadcast %cst_5 : f32 to vector<512x128xf32>
    %8 = arith.maximumf %6, %7 : vector<512x128xf32>
    %9 = arith.truncf %8 : vector<512x128xf32> to vector<512x128xbf16>
    %c0_6 = arith.constant 0 : index
    %c0_7 = arith.constant 0 : index
    %10 = vector.load %arg4[%c0_6, %c0_7] : memref<128x128xbf16, #tpu.memory_space<vmem>>, vector<128x128xbf16>
    %cst_8 = arith.constant dense<0.000000e+00> : vector<512x128xf32>
    %11 = tpu.matmul %9, %10, %cst_8 {dimension_numbers = #tpu.dot_dimension_numbers<[1], [0], [0], [1], [0, 0, 1, 1], [], []>} : vector<512x128xbf16>, vector<128x128xbf16>, vector<512x128xf32> -> vector<512x128xf32>
    %c0_9 = arith.constant 0 : index
    %c0_10 = arith.constant 0 : index
    %12 = vector.load %arg5[%c0_9, %c0_10] : memref<1x128xf32, #tpu.memory_space<vmem>>, vector<1x128xf32>
    %13 = vector.broadcast %12 : vector<1x128xf32> to vector<512x128xf32>
    %14 = arith.addf %11, %13 : vector<512x128xf32>
    %cst_11 = arith.constant 0.000000e+00 : f32
    %15 = vector.broadcast %cst_11 : f32 to vector<512x128xf32>
    %16 = arith.maximumf %14, %15 : vector<512x128xf32>
    %17 = arith.truncf %16 : vector<512x128xf32> to vector<512x128xbf16>
    %c0_12 = arith.constant 0 : index
    %c0_13 = arith.constant 0 : index
    %18 = vector.load %arg6[%c0_12, %c0_13] : memref<128x32xbf16, #tpu.memory_space<vmem>>, vector<128x32xbf16>
    %cst_14 = arith.constant dense<0.000000e+00> : vector<512x32xf32>
    %19 = tpu.matmul %17, %18, %cst_14 {dimension_numbers = #tpu.dot_dimension_numbers<[1], [0], [0], [1], [0, 0, 1, 1], [], []>} : vector<512x128xbf16>, vector<128x32xbf16>, vector<512x32xf32> -> vector<512x32xf32>
    %c0_15 = arith.constant 0 : index
    %c0_16 = arith.constant 0 : index
    %20 = vector.load %arg7[%c0_15, %c0_16] : memref<1x32xf32, #tpu.memory_space<vmem>>, vector<1x32xf32>
    %21 = vector.broadcast %20 : vector<1x32xf32> to vector<512x32xf32>
    %22 = arith.addf %19, %21 : vector<512x32xf32>
    %c0_17 = arith.constant 0 : index
    %c0_18 = arith.constant 0 : index
    %23 = vector.load %arg8[%c0_17, %c0_18] : memref<512x32xf32, #tpu.memory_space<vmem>>, vector<512x32xf32>
    tpu.vector_store %arg8[%c0_17, %c0_18], %22 {strides = array<i32>} : memref<512x32xf32, #tpu.memory_space<vmem>>, vector<512x32xf32>,
    return
  }
  func.func @transform_0(%arg0: i32) -> (i32, i32) {
    %c0_i32 = arith.constant 0 : i32
    %c0_i32_0 = arith.constant 0 : i32
    return %arg0, %c0_i32 : i32, i32
  }
  func.func @transform_1(%arg0: i32) -> (i32, i32) {
    %c0_i32 = arith.constant 0 : i32
    %c0_i32_0 = arith.constant 0 : i32
    %c0_i32_1 = arith.constant 0 : i32
    return %c0_i32, %c0_i32_0 : i32, i32
  }
  func.func @transform_2(%arg0: i32) -> (i32, i32) {
    %c0_i32 = arith.constant 0 : i32
    %c0_i32_0 = arith.constant 0 : i32
    %c0_i32_1 = arith.constant 0 : i32
    return %c0_i32, %c0_i32_0 : i32, i32
  }
  func.func @transform_3(%arg0: i32) -> (i32, i32) {
    %c0_i32 = arith.constant 0 : i32
    %c0_i32_0 = arith.constant 0 : i32
    %c0_i32_1 = arith.constant 0 : i32
    return %c0_i32, %c0_i32_0 : i32, i32
  }
  func.func @transform_4(%arg0: i32) -> (i32, i32) {
    %c0_i32 = arith.constant 0 : i32
    %c0_i32_0 = arith.constant 0 : i32
    %c0_i32_1 = arith.constant 0 : i32
    return %c0_i32, %c0_i32_0 : i32, i32
  }
  func.func @transform_5(%arg0: i32) -> (i32, i32) {
    %c0_i32 = arith.constant 0 : i32
    %c0_i32_0 = arith.constant 0 : i32
    %c0_i32_1 = arith.constant 0 : i32
    return %c0_i32, %c0_i32_0 : i32, i32
  }
  func.func @transform_6(%arg0: i32) -> (i32, i32) {
    %c0_i32 = arith.constant 0 : i32
    %c0_i32_0 = arith.constant 0 : i32
    %c0_i32_1 = arith.constant 0 : i32
    return %c0_i32, %c0_i32_0 : i32, i32
  }
  func.func @transform_7(%arg0: i32) -> (i32, i32) {
    %c0_i32 = arith.constant 0 : i32
    %c0_i32_0 = arith.constant 0 : i32
    return %arg0, %c0_i32 : i32, i32
  }
}

</mosaic_0001>

<bundles_post_ra>
// kernel: hybrid_model_forward.1
= control target key start
LH: loop header
LB: loop body
LE: loop exit
PB: predicated region body
PF: predicated region fallthrough
CT: control target
= control target key end

     0   :  { %12 = vsyncpa [#allocation3], 0  ;;  %s2598_s0 = inlined_call_operand.hbm [shape: f32[512,256], index: 0, kind: input, shape index: {}]   ;;  %s2599_s1 = inlined_call_operand.hbm [shape: bf16[256,128], index: 1, kind: input, shape index: {}]   ;;  %s2600_s2 = inlined_call_operand.vmem [shape: f32[1,128], index: 2, kind: input, shape index: {}]   ;;  %s2601_s3 = inlined_call_operand.vmem [shape: bf16[128,128], index: 3, kind: input, shape index: {}]   ;;  %s2602_s4 = inlined_call_operand.vmem [shape: f32[1,128], index: 4, kind: input, shape index: {}]   ;;  %s2603_s5 = inlined_call_operand.vmem [shape: bf16[128,32], index: 5, kind: input, shape index: {}]   ;;  %s2604_s6 = inlined_call_operand.vmem [shape: f32[1,32], index: 6, kind: input, shape index: {}]   ;;  %s2605_s7 = inlined_call_operand.vmem [shape: f32[512,32], index: 7, kind: output, shape index: {}]  }
   0x1   :  { %13 = vsyncpa [#allocation5], 0  ;;  %s2016_s24 = smov [#allocation2]   ;;  %s1968_s28 = scalar_lea.hbm %s2598_s0, 16384 }
   0x2   :  { %s19_s25 = sshll.u32 %s2016_s24, 4  ;;  %p1969_p0 = scmp.ne.s32.totalorder %s2598_s0, %s1968_s28  ;;  %s20_s25 = int_to_ptr.vmem [resolvable:$true] %s19_s25 }
   0x3   :  { %p1972_p1 = scmp.lt.u32.totalorder %s1968_s28, %s2598_s0 }
   0x5   :  { %p1974_p2 = pnand %p1972_p1, %p1969_p0 }
   0x7   :  { %1977 = shalt.err (!%p1974_p2)
}
   0x8   :  { %s1978_s10 = scalar_lea.vmem %s20_s25, 16384  ;;  %p1983_p4 = scmp.lt.s32.totalorder %s20_s25, %s20_s25 }
   0x9   :  { %p1979_p3 = scmp.ne.s32.totalorder %s20_s25, %s1978_s10  ;;  %p1984_p5 = scmp.lt.s32.totalorder %s1978_s10, %s1978_s10 }
   0xb   :  { %p1985_p6 = por %p1984_p5, %p1983_p4 }
   0xd   :  { %p1986_p7 = pnand %p1985_p6, %p1979_p3 }
   0xf   :  { %1989 = shalt.err (!%p1986_p7)
}
  0x10   :  { %s2017_s11 = smov 256   ;;  %s2018_s12 = smov 16  }
  0x11   :  { %25 = dma.hbm_to_vmem [thread:$0]  %s2598_s0, 16384, %s20_s25, [#allocation3], %s2017_s11, %s2017_s11, %s2018_s12  }
  0x12   :  { %s2019_s15 = smov [#allocation4]   ;;  %s1990_s19 = scalar_lea.hbm %s2599_s1, 2048 }
  0x13   :  { %s31_s16 = sshll.u32 %s2019_s15, 4  ;;  %p1991_p8 = scmp.ne.s32.totalorder %s2599_s1, %s1990_s19  ;;  %s32_s16 = int_to_ptr.vmem [resolvable:$true] %s31_s16 }
  0x14   :  { %p1994_p9 = scmp.lt.u32.totalorder %s1990_s19, %s2599_s1 }
  0x16   :  { %p1996_p10 = pnand %p1994_p9, %p1991_p8 }
  0x18   :  { %1999 = shalt.err (!%p1996_p10)
}
  0x19   :  { %s2000_s24 = scalar_lea.vmem %s32_s16, 2048  ;;  %p2005_p12 = scmp.lt.s32.totalorder %s32_s16, %s32_s16 }
  0x1a   :  { %p2001_p11 = scmp.ne.s32.totalorder %s32_s16, %s2000_s24  ;;  %p2006_p13 = scmp.lt.s32.totalorder %s2000_s24, %s2000_s24 }
  0x1c   :  { %p2007_p0 = por %p2006_p13, %p2005_p12 }
  0x1e   :  { %p2008_p1 = pnand %p2007_p0, %p2001_p11 }
  0x20   :  { %2011 = shalt.err (!%p2008_p1)
}
  0x21   :  { %s2020_s0 = smov 64   ;;  %s2021_s25 = smov 4  }
  0x22   :  { %37 = dma.hbm_to_vmem [thread:$0]  %s2599_s1, 2048, %s32_s16, [#allocation5], %s2020_s0, %s2020_s0, %s2021_s25  }
  0x23   :  { %2012 = dma.done.wait [#allocation3], 16384  }
  0x24   :  { %2013 = vsyncadd [#allocation3], 4294950912 }
  0x25   :  { %2014 = dma.done.wait [#allocation5], 2048  }
  0x26   :  { %2015 = vsyncadd [#allocation5], 4294965248  ;;  %v2022_v0 = vmov 0   ;;  %v1936_v1 = vld [vmem:[#allocation4] sm:$0xff]   ;;  %v1937_v2 = vld [vmem:[#allocation4 + $0x8] sm:$0xff]   ;;  %vm1583_vm0 = vcmask 261120  }
  0x27   :  { %382 = vmatprep.subr.bf16.mxu0 %v2022_v0  ;;  %v1938_v3 = vld [vmem:[#allocation4 + $0x10] sm:$0xff]   ;;  %v1939_v4 = vld [vmem:[#allocation4 + $0x18] sm:$0xff]   ;;  %v1940_v5 = vld [vmem:[#allocation4 + $0x20] sm:$0xff]  }
  0x28   :  { %383 = vmatpush1.bf16.msra.mxu0 %v1936_v1  ;;  %v56_v6 = vld [vmem:[#allocation2 + $0x8] sm:$0xff]  ;;  %v58_v7 = vld [vmem:[#allocation2 + $0x18] sm:$0xff]  ;;  %v1942_v10 = vld [vmem:[#allocation4 + $0x30] sm:$0xff]  }
  0x29   :  { %384 = vmatprep.subr.bf16.mxu0 %v2022_v0  ;;  %v184_v8 = vpack.c.bf16 %v58_v7, %v56_v6  ;;  %v1941_v9 = vld [vmem:[#allocation4 + $0x28] sm:$0xff]   ;;  %v1943_v11 = vld [vmem:[#allocation4 + $0x38] sm:$0xff]   ;;  %v1944_v12 = vld [vmem:[#allocation4 + $0x40] sm:$0xff]  }
  0x2a   :  { %v1945_v13 = vld [vmem:[#allocation4 + $0x48] sm:$0xff]   ;;  %v1946_v14 = vld [vmem:[#allocation4 + $0x50] sm:$0xff]   ;;  %v1947_v15 = vld [vmem:[#allocation4 + $0x58] sm:$0xff]  }
  0x2b   :  { %414 = vmatprep.mubr.bf16.mxu0 %v184_v8  ;;  %v1948_v16 = vld [vmem:[#allocation4 + $0x60] sm:$0xff]   ;;  %v1949_v17 = vld [vmem:[#allocation4 + $0x68] sm:$0xff]   ;;  %v1950_v18 = vld [vmem:[#allocation4 + $0x70] sm:$0xff]  }
  0x2c   :  { %385 = vmatpush1.bf16.msra.mxu0 %v1937_v2  ;;  %v1951_v19 = vld [vmem:[#allocation4 + $0x78] sm:$0xff]   ;;  %v55_v20 = vld [vmem:[#allocation2] sm:$0xff]  ;;  %v57_v21 = vld [vmem:[#allocation2 + $0x10] sm:$0xff] }
  0x2d   :  { %386 = vmatprep.subr.bf16.mxu0 %v2022_v0  ;;  %v60_v22 = vld [vmem:[#allocation2 + $0x28] sm:$0xff]  ;;  %v62_v23 = vld [vmem:[#allocation2 + $0x38] sm:$0xff]  ;;  %v183_v24 = vpack.c.bf16 %v57_v21, %v55_v20  ;;  %v59_v26 = vld [vmem:[#allocation2 + $0x20] sm:$0xff] }
  0x2e   :  { %v186_v25 = vpack.c.bf16 %v62_v23, %v60_v22  ;;  %v61_v27 = vld [vmem:[#allocation2 + $0x30] sm:$0xff]  ;;  %v64_v28 = vld [vmem:[#allocation2 + $0x48] sm:$0xff]  ;;  %v66_v29 = vld [vmem:[#allocation2 + $0x58] sm:$0xff] }
  0x2f   :  { %v185_v30 = vpack.c.bf16 %v61_v27, %v59_v26  ;;  %v188_v31 = vpack.c.bf16 %v66_v29, %v64_v28  ;;  %v63_v32 = vld [vmem:[#allocation2 + $0x40] sm:$0xff]  ;;  %v65_v33 = vld [vmem:[#allocation2 + $0x50] sm:$0xff]  ;;  %v68_v34 = vld [vmem:[#allocation2 + $0x68] sm:$0xff] }
  0x30   :  { %387 = vmatpush1.bf16.msra.mxu0 %v1938_v3  ;;  %v70_v35 = vld [vmem:[#allocation2 + $0x78] sm:$0xff]  ;;  %v187_v36 = vpack.c.bf16 %v65_v33, %v63_v32  ;;  %v67_v38 = vld [vmem:[#allocation2 + $0x60] sm:$0xff]  ;;  %v69_v39 = vld [vmem:[#allocation2 + $0x70] sm:$0xff] }
  0x31   :  { %388 = vmatprep.subr.bf16.mxu0 %v2022_v0  ;;  %v190_v37 = vpack.c.bf16 %v70_v35, %v68_v34  ;;  %v72_v40 = vld [vmem:[#allocation2 + $0x88] sm:$0xff]  ;;  %v74_v41 = vld [vmem:[#allocation2 + $0x98] sm:$0xff]  ;;  %v189_v42 = vpack.c.bf16 %v69_v39, %v67_v38  ;;  %v71_v44 = vld [vmem:[#allocation2 + $0x80] sm:$0xff] }
  0x32   :  { %v192_v43 = vpack.c.bf16 %v74_v41, %v72_v40  ;;  %v73_v45 = vld [vmem:[#allocation2 + $0x90] sm:$0xff]  ;;  %v76_v46 = vld [vmem:[#allocation2 + $0xa8] sm:$0xff]  ;;  %v78_v47 = vld [vmem:[#allocation2 + $0xb8] sm:$0xff] }
  0x33   :  { %v191_v48 = vpack.c.bf16 %v73_v45, %v71_v44  ;;  %v194_v49 = vpack.c.bf16 %v78_v47, %v76_v46  ;;  %v75_v50 = vld [vmem:[#allocation2 + $0xa0] sm:$0xff]  ;;  %v77_v51 = vld [vmem:[#allocation2 + $0xb0] sm:$0xff]  ;;  %v80_v52 = vld [vmem:[#allocation2 + $0xc8] sm:$0xff] }
  0x34   :  { %389 = vmatpush1.bf16.msra.mxu0 %v1939_v4  ;;  %v82_v53 = vld [vmem:[#allocation2 + $0xd8] sm:$0xff]  ;;  %v193_v54 = vpack.c.bf16 %v77_v51, %v75_v50  ;;  %v79_v56 = vld [vmem:[#allocation2 + $0xc0] sm:$0xff]  ;;  %v81_v57 = vld [vmem:[#allocation2 + $0xd0] sm:$0xff] }
  0x35   :  { %390 = vmatprep.subr.bf16.mxu0 %v2022_v0  ;;  %v196_v55 = vpack.c.bf16 %v82_v53, %v80_v52  ;;  %v84_v58 = vld [vmem:[#allocation2 + $0xe8] sm:$0xff]  ;;  %v86_v59 = vld [vmem:[#allocation2 + $0xf8] sm:$0xff]  ;;  %v195_v60 = vpack.c.bf16 %v81_v57, %v79_v56  ;;  %v83_v62 = vld [vmem:[#allocation2 + $0xe0] sm:$0xff] }
  0x36   :  { %v198_v61 = vpack.c.bf16 %v86_v59, %v84_v58  ;;  %v85_v63 = vld [vmem:[#allocation2 + $0xf0] sm:$0xff]  ;;  %v90_v1 = vld [vmem:[#allocation2 + $0x118] sm:$0xff]  ;;  %v87_v4 = vld [vmem:[#allocation2 + $0x100] sm:$0xff] }
  0x37   :  { %v197_v2 = vpack.c.bf16 %v85_v63, %v83_v62  ;;  %v92_v6 = vld [vmem:[#allocation2 + $0x128] sm:$0xff]  ;;  %v94_v7 = vld [vmem:[#allocation2 + $0x138] sm:$0xff]  ;;  %v97_v20 = vld [vmem:[#allocation2 + $0x150] sm:$0xff] }
  0x38   :  { %391 = vmatpush1.bf16.msra.mxu0 %v1940_v5  ;;  %v89_v5 = vld [vmem:[#allocation2 + $0x110] sm:$0xff]  ;;  %v100_v21 = vld [vmem:[#allocation2 + $0x168] sm:$0xff]  ;;  %v102_v22 = vld [vmem:[#allocation2 + $0x178] sm:$0xff] }
  0x39   :  { %392 = vmatprep.subr.bf16.mxu0 %v2022_v0  ;;  %v199_v8 = vpack.c.bf16 %v89_v5, %v87_v4  ;;  %v99_v26 = vld [vmem:[#allocation2 + $0x160] sm:$0xff]  ;;  %v101_v27 = vld [vmem:[#allocation2 + $0x170] sm:$0xff]  ;;  %v104_v28 = vld [vmem:[#allocation2 + $0x188] sm:$0xff] }
  0x3a   :  { %v106_v29 = vld [vmem:[#allocation2 + $0x198] sm:$0xff]  ;;  %v1957_v33 = vld [vmem:[%s2601_s3 + $0x28] sm:$0xff]   ;;  %v103_v34 = vld [vmem:[#allocation2 + $0x180] sm:$0xff] }
  0x3b   :  { %v208_v32 = vpack.c.bf16 %v106_v29, %v104_v28  ;;  %v105_v35 = vld [vmem:[#allocation2 + $0x190] sm:$0xff]  ;;  %v1959_v41 = vld [vmem:[%s2601_s3 + $0x38] sm:$0xff]   ;;  %v112_v44 = vld [vmem:[#allocation2 + $0x1c8] sm:$0xff] }
  0x3c   :  { %393 = vmatpush1.bf16.msra.mxu0 %v1941_v9  ;;  %v202_v9 = vpack.c.bf16 %v94_v7, %v92_v6  ;;  %v1958_v38 = vld [vmem:[%s2601_s3 + $0x30] sm:$0xff]   ;;  %v207_v39 = vpack.c.bf16 %v105_v35, %v103_v34  ;;  %v114_v45 = vld [vmem:[#allocation2 + $0x1d8] sm:$0xff]  ;;  %v116_v50 = vld [vmem:[#allocation2 + $0x1e8] sm:$0xff] }
  0x3d   :  { %394 = vmatprep.subr.bf16.mxu0 %v2022_v0  ;;  %v212_v47 = vpack.c.bf16 %v114_v45, %v112_v44  ;;  %v118_v51 = vld [vmem:[#allocation2 + $0x1f8] sm:$0xff]  ;;  %v120_v56 = vld [vmem:[#allocation2 + $0x208] sm:$0xff]  ;;  %v151_v44 = vld [vmem:[#allocation2 + $0x300] sm:$0xff] }
  0x3e   :  { %v214_v53 = vpack.c.bf16 %v118_v51, %v116_v50  ;;  %v122_v57 = vld [vmem:[#allocation2 + $0x218] sm:$0xff]  ;;  %v124_v62 = vld [vmem:[#allocation2 + $0x228] sm:$0xff]  ;;  %v153_v45 = vld [vmem:[#allocation2 + $0x310] sm:$0xff] }
  0x3f   :  { %v216_v59 = vpack.c.bf16 %v122_v57, %v120_v56  ;;  %v126_v63 = vld [vmem:[#allocation2 + $0x238] sm:$0xff]  ;;  %v128_v4 = vld [vmem:[#allocation2 + $0x248] sm:$0xff]  ;;  %v155_v50 = vld [vmem:[#allocation2 + $0x320] sm:$0xff] }
  0x40   :  { %395 = vmatpush1.bf16.msra.mxu0 %v1942_v10  ;;  %v1952_v10 = vld [vmem:[%s2601_s3] sm:$0xff]   ;;  %v130_v5 = vld [vmem:[#allocation2 + $0x258] sm:$0xff]  ;;  %v144_v28 = vld [vmem:[#allocation2 + $0x2c8] sm:$0xff] }
  0x41   :  { %396 = vmatprep.subr.bf16.mxu0 %v2022_v0  ;;  %1769 = vmatprep.subr.bf16.mxu1 %v1952_v10  ;;  %v220_v7 = vpack.c.bf16 %v130_v5, %v128_v4  ;;  %v146_v29 = vld [vmem:[#allocation2 + $0x2d8] sm:$0xff]  ;;  %v148_v34 = vld [vmem:[#allocation2 + $0x2e8] sm:$0xff]  ;;  %v157_v51 = vld [vmem:[#allocation2 + $0x330] sm:$0xff] }
  0x42   :  { %1770 = vmatpush3.bf16.msra.mxu1 %v1952_v10  ;;  %v132_v10 = vld [vmem:[#allocation2 + $0x268] sm:$0xff]  ;;  %v150_v35 = vld [vmem:[#allocation2 + $0x2f8] sm:$0xff]  ;;  %v159_v56 = vld [vmem:[#allocation2 + $0x340] sm:$0xff] }
  0x43   :  { %v161_v57 = vld [vmem:[#allocation2 + $0x350] sm:$0xff] }
  0x44   :  { %397 = vmatpush1.bf16.msra.mxu0 %v1943_v11  ;;  %v91_v11 = vld [vmem:[#allocation2 + $0x120] sm:$0xff] }
  0x45   :  { %398 = vmatprep.subr.bf16.mxu0 %v2022_v0 }
  0x48   :  { %399 = vmatpush1.bf16.msra.mxu0 %v1944_v12  ;;  %v93_v12 = vld [vmem:[#allocation2 + $0x130] sm:$0xff] }
  0x49   :  { %400 = vmatprep.subr.bf16.mxu0 %v2022_v0 }
  0x4c   :  { %401 = vmatpush1.bf16.msra.mxu0 %v1945_v13  ;;  %v96_v13 = vld [vmem:[#allocation2 + $0x148] sm:$0xff] }
  0x4d   :  { %402 = vmatprep.subr.bf16.mxu0 %v2022_v0 }
  0x50   :  { %403 = vmatpush1.bf16.msra.mxu0 %v1946_v14  ;;  %v98_v14 = vld [vmem:[#allocation2 + $0x158] sm:$0xff] }
  0x51   :  { %404 = vmatprep.subr.bf16.mxu0 %v2022_v0 }
  0x54   :  { %405 = vmatpush1.bf16.msra.mxu0 %v1947_v15  ;;  %v201_v15 = vpack.c.bf16 %v93_v12, %v91_v11  ;;  %v134_v11 = vld [vmem:[#allocation2 + $0x278] sm:$0xff] }
  0x55   :  { %406 = vmatprep.subr.bf16.mxu0 %v2022_v0 }
  0x58   :  { %407 = vmatpush1.bf16.msra.mxu0 %v1948_v16  ;;  %v204_v16 = vpack.c.bf16 %v98_v14, %v96_v13  ;;  %v222_v13 = vpack.c.bf16 %v134_v11, %v132_v10  ;;  %v131_v14 = vld [vmem:[#allocation2 + $0x260] sm:$0xff] }
  0x59   :  { %408 = vmatprep.subr.bf16.mxu0 %v2022_v0 }
  0x5c   :  { %409 = vmatpush1.bf16.msra.mxu0 %v1949_v17  ;;  %v1953_v17 = vld [vmem:[%s2601_s3 + $0x8] sm:$0xff]  }
  0x5d   :  { %410 = vmatprep.subr.bf16.mxu0 %v2022_v0  ;;  %1771 = vmatprep.subr.bf16.mxu1 %v1953_v17 }
  0x5e   :  { %1772 = vmatpush3.bf16.msra.mxu1 %v1953_v17  ;;  %v138_v17 = vld [vmem:[#allocation2 + $0x298] sm:$0xff] }
  0x60   :  { %411 = vmatpush1.bf16.msra.mxu0 %v1950_v18  ;;  %v1954_v18 = vld [vmem:[%s2601_s3 + $0x10] sm:$0xff]  }
  0x61   :  { %412 = vmatprep.subr.bf16.mxu0 %v2022_v0  ;;  %v88_v0 = vld [vmem:[#allocation2 + $0x108] sm:$0xff]  ;;  %1773 = vmatprep.subr.bf16.mxu1 %v1954_v18 }
  0x62   :  { %v200_v3 = vpack.c.bf16 %v90_v1, %v88_v0  ;;  %1774 = vmatpush3.bf16.msra.mxu1 %v1954_v18  ;;  %v218_v1 = vpack.c.bf16 %v126_v63, %v124_v62  ;;  %v2114_v62 = vld [vmem:[%s2600_s2] ss:$0 sm:$0xff] }
  0x63   :  { %v163_v63 = vld [vmem:[#allocation2 + $0x360] sm:$0xff] }
  0x64   :  { %413 = vmatpush1.bf16.msra.mxu0 %v1951_v19  ;;  %v95_v19 = vld [vmem:[#allocation2 + $0x140] sm:$0xff] }
  0x65   :  { %v203_v23 = vpack.c.bf16 %v97_v20, %v95_v19  ;;  %v135_v20 = vld [vmem:[#allocation2 + $0x280] sm:$0xff] }
  0x67   :  { %415 = vmatmul.mubr.bf16.vlgmr.msra.gmra.mrb[0].mxu0 %v183_v24  ;;  %v206_v24 = vpack.c.bf16 %v102_v22, %v100_v21  ;;  %v137_v21 = vld [vmem:[#allocation2 + $0x290] sm:$0xff]  ;;  %v140_v22 = vld [vmem:[#allocation2 + $0x2a8] sm:$0xff] }
  0x68   :  { %422 = vmatprep.mubr.bf16.mxu0 %v186_v25  ;;  %v1955_v25 = vld [vmem:[%s2601_s3 + $0x18] sm:$0xff]  }
  0x69   :  { %1775 = vmatprep.subr.bf16.mxu1 %v1955_v25 }
  0x6a   :  { %1776 = vmatpush3.bf16.msra.mxu1 %v1955_v25 }
  0x6f   :  { %423 = vmatmul.mubr.bf16.gmra.mrb[4].mxu0 %v185_v30  ;;  %v1956_v30 = vld [vmem:[%s2601_s3 + $0x20] sm:$0xff]  }
  0x70   :  { %430 = vmatprep.mubr.bf16.mxu0 %v188_v31  ;;  %v205_v31 = vpack.c.bf16 %v101_v27, %v99_v26  ;;  %1777 = vmatprep.subr.bf16.mxu1 %v1956_v30  ;;  %v139_v26 = vld [vmem:[#allocation2 + $0x2a0] sm:$0xff]  ;;  %v141_v27 = vld [vmem:[#allocation2 + $0x2b0] sm:$0xff] }
  0x71   :  { %1778 = vmatpush3.bf16.msra.mxu1 %v1956_v30  ;;  %v225_v30 = vpack.c.bf16 %v141_v27, %v139_v26 }
  0x72   :  { %1779 = vmatprep.subr.bf16.mxu1 %v1957_v33 }
  0x75   :  { %1780 = vmatpush3.bf16.msra.mxu1 %v1957_v33  ;;  %v145_v33 = vld [vmem:[#allocation2 + $0x2d0] sm:$0xff] }
  0x76   :  { %1781 = vmatprep.subr.bf16.mxu1 %v1958_v38 }
  0x77   :  { %431 = vmatmul.mubr.bf16.gmra.mrb[8].mxu0 %v187_v36  ;;  %v108_v36 = vld [vmem:[#allocation2 + $0x1a8] sm:$0xff] }
  0x78   :  { %438 = vmatprep.mubr.bf16.mxu0 %v190_v37  ;;  %v110_v37 = vld [vmem:[#allocation2 + $0x1b8] sm:$0xff] }
  0x79   :  { %v210_v40 = vpack.c.bf16 %v110_v37, %v108_v36  ;;  %1782 = vmatpush3.bf16.msra.mxu1 %v1958_v38  ;;  %v230_v37 = vpack.c.bf16 %v150_v35, %v148_v34  ;;  %v147_v38 = vld [vmem:[#allocation2 + $0x2e0] sm:$0xff] }
  0x7a   :  { %1783 = vmatprep.subr.bf16.mxu1 %v1959_v41 }
  0x7d   :  { %1784 = vmatpush3.bf16.msra.mxu1 %v1959_v41  ;;  %v154_v41 = vld [vmem:[#allocation2 + $0x318] sm:$0xff] }
  0x7f   :  { %439 = vmatmul.mubr.bf16.gmra.mrb[12].mxu0 %v189_v42  ;;  %v107_v42 = vld [vmem:[#allocation2 + $0x1a0] sm:$0xff] }
  0x80   :  { %446 = vmatprep.mubr.bf16.mxu0 %v192_v43  ;;  %v109_v43 = vld [vmem:[#allocation2 + $0x1b0] sm:$0xff] }
  0x81   :  { %v209_v46 = vpack.c.bf16 %v109_v43, %v107_v42 }
  0x87   :  { %447 = vmatmul.mubr.bf16.gmra.mrb[16].mxu0 %v191_v48  ;;  %v111_v48 = vld [vmem:[#allocation2 + $0x1c0] sm:$0xff] }
  0x88   :  { %454 = vmatprep.mubr.bf16.mxu0 %v194_v49  ;;  %v113_v49 = vld [vmem:[#allocation2 + $0x1d0] sm:$0xff] }
  0x89   :  { %v211_v52 = vpack.c.bf16 %v113_v49, %v111_v48  ;;  %v231_v48 = vpack.c.bf16 %v153_v45, %v151_v44  ;;  %v177_v44 = vld [vmem:[#allocation2 + $0x3d0] sm:$0xff] }
  0x8f   :  { %455 = vmatmul.mubr.bf16.gmra.mrb[20].mxu0 %v193_v54  ;;  %v115_v54 = vld [vmem:[#allocation2 + $0x1e0] sm:$0xff] }
  0x90   :  { %462 = vmatprep.mubr.bf16.mxu0 %v196_v55  ;;  %v117_v55 = vld [vmem:[#allocation2 + $0x1f0] sm:$0xff] }
  0x91   :  { %v213_v58 = vpack.c.bf16 %v117_v55, %v115_v54  ;;  %v233_v54 = vpack.c.bf16 %v157_v51, %v155_v50 }
  0x97   :  { %463 = vmatmul.mubr.bf16.gmra.mrb[24].mxu0 %v195_v60  ;;  %v119_v60 = vld [vmem:[#allocation2 + $0x200] sm:$0xff] }
  0x98   :  { %470 = vmatprep.mubr.bf16.mxu0 %v198_v61  ;;  %v121_v61 = vld [vmem:[#allocation2 + $0x210] sm:$0xff] }
  0x99   :  { %v215_v0 = vpack.c.bf16 %v121_v61, %v119_v60  ;;  %v235_v60 = vpack.c.bf16 %v161_v57, %v159_v56 }
  0x9f   :  { %471 = vmatmul.mubr.bf16.gmra.mrb[28].mxu0 %v197_v2  ;;  %v123_v2 = vld [vmem:[#allocation2 + $0x220] sm:$0xff] }
  0xa0   :  { %478 = vmatprep.mubr.bf16.mxu0 %v200_v3  ;;  %v125_v3 = vld [vmem:[#allocation2 + $0x230] sm:$0xff] }
  0xa1   :  { %v217_v6 = vpack.c.bf16 %v125_v3, %v123_v2  ;;  %v170_v2 = vld [vmem:[#allocation2 + $0x398] sm:$0xff] }
  0xa7   :  { %479 = vmatmul.mubr.bf16.gmra.mrb[32].mxu0 %v199_v8  ;;  %v127_v8 = vld [vmem:[#allocation2 + $0x240] sm:$0xff] }
  0xa8   :  { %486 = vmatprep.mubr.bf16.mxu0 %v202_v9  ;;  %v129_v9 = vld [vmem:[#allocation2 + $0x250] sm:$0xff] }
  0xa9   :  { %v219_v12 = vpack.c.bf16 %v129_v9, %v127_v8 }
  0xaf   :  { %487 = vmatmul.mubr.bf16.gmra.mrb[36].mxu0 %v201_v15  ;;  %v133_v15 = vld [vmem:[#allocation2 + $0x270] sm:$0xff] }
  0xb0   :  { %494 = vmatprep.mubr.bf16.mxu0 %v204_v16  ;;  %v136_v16 = vld [vmem:[#allocation2 + $0x288] sm:$0xff]  ;;  %v221_v18 = vpack.c.bf16 %v133_v15, %v131_v14  ;;  %v169_v14 = vld [vmem:[#allocation2 + $0x390] sm:$0xff] }
  0xb1   :  { %v224_v19 = vpack.c.bf16 %v138_v17, %v136_v16  ;;  %v172_v16 = vld [vmem:[#allocation2 + $0x3a8] sm:$0xff]  ;;  %v174_v17 = vld [vmem:[#allocation2 + $0x3b8] sm:$0xff] }
  0xb7   :  { %495 = vmatmul.mubr.bf16.gmra.mrb[40].mxu0 %v203_v23  ;;  %v142_v23 = vld [vmem:[#allocation2 + $0x2b8] sm:$0xff] }
  0xb8   :  { %502 = vmatprep.mubr.bf16.mxu0 %v206_v24  ;;  %v223_v24 = vpack.c.bf16 %v137_v21, %v135_v20  ;;  %v226_v25 = vpack.c.bf16 %v142_v23, %v140_v22  ;;  %v242_v23 = vpack.c.bf16 %v174_v17, %v172_v16 }
  0xbf   :  { %503 = vmatmul.mubr.bf16.gmra.mrb[44].mxu0 %v205_v31  ;;  %v228_v31 = vpack.c.bf16 %v146_v29, %v144_v28  ;;  %v171_v28 = vld [vmem:[#allocation2 + $0x3a0] sm:$0xff]  ;;  %v173_v29 = vld [vmem:[#allocation2 + $0x3b0] sm:$0xff] }
  0xc0   :  { %510 = vmatprep.mubr.bf16.mxu0 %v208_v32  ;;  %v143_v32 = vld [vmem:[#allocation2 + $0x2c0] sm:$0xff] }
  0xc1   :  { %v227_v36 = vpack.c.bf16 %v145_v33, %v143_v32  ;;  %v178_v32 = vld [vmem:[#allocation2 + $0x3d8] sm:$0xff] }
  0xc7   :  { %511 = vmatmul.mubr.bf16.gmra.mrb[48].mxu0 %v207_v39  ;;  %v149_v39 = vld [vmem:[#allocation2 + $0x2f0] sm:$0xff] }
  0xc8   :  { %518 = vmatprep.mubr.bf16.mxu0 %v210_v40  ;;  %v152_v40 = vld [vmem:[#allocation2 + $0x308] sm:$0xff]  ;;  %v229_v42 = vpack.c.bf16 %v149_v39, %v147_v38 }
  0xc9   :  { %v232_v43 = vpack.c.bf16 %v154_v41, %v152_v40 }
  0xcf   :  { %519 = vmatmul.mubr.bf16.gmra.mrb[52].mxu0 %v209_v46  ;;  %v156_v46 = vld [vmem:[#allocation2 + $0x328] sm:$0xff] }
  0xd0   :  { %526 = vmatprep.mubr.bf16.mxu0 %v212_v47  ;;  %v158_v47 = vld [vmem:[#allocation2 + $0x338] sm:$0xff] }
  0xd1   :  { %v234_v49 = vpack.c.bf16 %v158_v47, %v156_v46  ;;  %v180_v46 = vld [vmem:[#allocation2 + $0x3e8] sm:$0xff]  ;;  %v182_v47 = vld [vmem:[#allocation2 + $0x3f8] sm:$0xff] }
  0xd7   :  { %527 = vmatmul.mubr.bf16.gmra.mrb[56].mxu0 %v211_v52  ;;  %v160_v52 = vld [vmem:[#allocation2 + $0x348] sm:$0xff] }
  0xd8   :  { %534 = vmatprep.mubr.bf16.mxu0 %v214_v53  ;;  %v162_v53 = vld [vmem:[#allocation2 + $0x358] sm:$0xff] }
  0xd9   :  { %v236_v55 = vpack.c.bf16 %v162_v53, %v160_v52  ;;  %v246_v53 = vpack.c.bf16 %v182_v47, %v180_v46 }
  0xdf   :  { %535 = vmatmul.mubr.bf16.gmra.mrb[60].mxu0 %v213_v58  ;;  %v164_v58 = vld [vmem:[#allocation2 + $0x368] sm:$0xff] }
  0xe0   :  { %542 = vmatprep.mubr.bf16.mxu0 %v216_v59  ;;  %v166_v59 = vld [vmem:[#allocation2 + $0x378] sm:$0xff] }
  0xe1   :  { %v238_v61 = vpack.c.bf16 %v166_v59, %v164_v58  ;;  %v179_v58 = vld [vmem:[#allocation2 + $0x3e0] sm:$0xff]  ;;  %v181_v59 = vld [vmem:[#allocation2 + $0x3f0] sm:$0xff] }
  0xe7   :  { %543 = vmatmul.mubr.bf16.gmra.mrb[64].mxu0 %v215_v0  ;;  %v165_v0 = vld [vmem:[#allocation2 + $0x370] sm:$0xff] }
  0xe8   :  { %550 = vmatprep.mubr.bf16.mxu0 %v218_v1  ;;  %v168_v1 = vld [vmem:[#allocation2 + $0x388] sm:$0xff] }
  0xe9   :  { %v240_v8 = vpack.c.bf16 %v170_v2, %v168_v1  ;;  %v245_v1 = vpack.c.bf16 %v181_v59, %v179_v58 }
  0xef   :  { %551 = vmatmul.mubr.bf16.gmra.mrb[68].mxu0 %v217_v6  ;;  %v237_v6 = vpack.c.bf16 %v165_v0, %v163_v63 }
  0xf0   :  { %558 = vmatprep.mubr.bf16.mxu0 %v220_v7 }
  0xf7   :  { %559 = vmatmul.mubr.bf16.gmra.mrb[72].mxu0 %v219_v12 }
  0xf8   :  { %566 = vmatprep.mubr.bf16.mxu0 %v222_v13  ;;  %v167_v13 = vld [vmem:[#allocation2 + $0x380] sm:$0xff] }
  0xf9   :  { %v239_v21 = vpack.c.bf16 %v169_v14, %v167_v13 }
  0xff   :  { %567 = vmatmul.mubr.bf16.gmra.mrb[76].mxu0 %v221_v18 }
 0x100   :  { %574 = vmatprep.mubr.bf16.mxu0 %v224_v19 }
 0x107   :  { %575 = vmatmul.mubr.bf16.gmra.mrb[80].mxu0 %v223_v24 }
 0x108   :  { %582 = vmatprep.mubr.bf16.mxu0 %v226_v25 }
 0x10f   :  { %583 = vmatmul.mubr.bf16.gmra.mrb[84].mxu0 %v225_v30 }
 0x110   :  { %590 = vmatprep.mubr.bf16.mxu0 %v228_v31  ;;  %v176_v31 = vld [vmem:[#allocation2 + $0x3c8] sm:$0xff] }
 0x111   :  { %v244_v38 = vpack.c.bf16 %v178_v32, %v176_v31 }
 0x117   :  { %591 = vmatmul.mubr.bf16.gmra.mrb[88].mxu0 %v227_v36  ;;  %v241_v36 = vpack.c.bf16 %v173_v29, %v171_v28 }
 0x118   :  { %598 = vmatprep.mubr.bf16.mxu0 %v230_v37 }
 0x11f   :  { %599 = vmatmul.mubr.bf16.gmra.mrb[92].mxu0 %v229_v42 }
 0x120   :  { %606 = vmatprep.mubr.bf16.mxu0 %v232_v43  ;;  %v175_v43 = vld [vmem:[#allocation2 + $0x3c0] sm:$0xff] }
 0x121   :  { %v243_v51 = vpack.c.bf16 %v177_v44, %v175_v43 }
 0x127   :  { %607 = vmatmul.mubr.bf16.gmra.mrb[96].mxu0 %v231_v48 }
 0x128   :  { %614 = vmatprep.mubr.bf16.mxu0 %v234_v49 }
 0x12f   :  { %615 = vmatmul.mubr.bf16.gmra.mrb[100].mxu0 %v233_v54 }
 0x130   :  { %622 = vmatprep.mubr.bf16.mxu0 %v236_v55 }
 0x137   :  { %623 = vmatmul.mubr.bf16.gmra.mrb[104].mxu0 %v235_v60 }
 0x138   :  { %630 = vmatprep.mubr.bf16.mxu0 %v238_v61 }
 0x13a   :  { %v416_v3 = vpop.f32.mrb[0].mxu0 }
 0x13b   :  { %v417_v4 = vadd.f32 %v2114_v62, %v416_v3  ;;  %v418_v5 = vpop.f32.mrb[1].mxu0 }
 0x13c   :  { %v419_v7 = vpop.f32.mrb[2].mxu0 }
 0x13d   :  { %v420_v9 = vadd.f32 %v2114_v62, %v419_v7  ;;  %v421_v10 = vpop.f32.mrb[3].mxu0  ;;  %v671_v11 = vmax.f32 %v417_v4, 0.0 }
 0x13f   :  { %v672_v12 = vmax.f32 %v420_v9, 0.0  ;;  %631 = vmatmul.mubr.bf16.gmra.mrb[108].mxu0 %v237_v6 }
 0x140   :  { %638 = vmatprep.mubr.bf16.mxu0 %v240_v8 }
 0x141   :  { %v735_v15 = vpack.c.bf16 %v672_v12, %v671_v11 }
 0x142   :  { %v424_v18 = vpop.f32.mrb[4].mxu0 }
 0x143   :  { %v425_v19 = vadd.f32 %v2114_v62, %v424_v18  ;;  %v426_v20 = vpop.f32.mrb[5].mxu0  ;;  %1785 = vmatprep.mubr.bf16.mxu1 %v735_v15 }
 0x144   :  { %v427_v22 = vpop.f32.mrb[6].mxu0 }
 0x145   :  { %v428_v24 = vadd.f32 %v2114_v62, %v427_v22  ;;  %v429_v25 = vpop.f32.mrb[7].mxu0  ;;  %v673_v26 = vmax.f32 %v425_v19, 0.0 }
 0x147   :  { %v674_v27 = vmax.f32 %v428_v24, 0.0  ;;  %639 = vmatmul.mubr.bf16.gmra.mrb[112].mxu0 %v239_v21 }
 0x148   :  { %646 = vmatprep.mubr.bf16.mxu0 %v242_v23 }
 0x149   :  { %v736_v30 = vpack.c.bf16 %v674_v27, %v673_v26 }
 0x14a   :  { %v432_v33 = vpop.f32.mrb[8].mxu0 }
 0x14b   :  { %v433_v34 = vadd.f32 %v2114_v62, %v432_v33  ;;  %v434_v35 = vpop.f32.mrb[9].mxu0  ;;  %1786 = vmatmul.mubr.bf16.vlgmr.msra.gmra.mrb[0].mxu1 %v736_v30 }
 0x14c   :  { %v435_v37 = vpop.f32.mrb[10].mxu0 }
 0x14d   :  { %v436_v39 = vadd.f32 %v2114_v62, %v435_v37  ;;  %v437_v40 = vpop.f32.mrb[11].mxu0  ;;  %v675_v41 = vmax.f32 %v433_v34, 0.0 }
 0x14f   :  { %v676_v42 = vmax.f32 %v436_v39, 0.0  ;;  %647 = vmatmul.mubr.bf16.gmra.mrb[116].mxu0 %v241_v36 }
 0x150   :  { %654 = vmatprep.mubr.bf16.mxu0 %v244_v38 }
 0x151   :  { %v737_v45 = vpack.c.bf16 %v676_v42, %v675_v41 }
 0x152   :  { %v440_v48 = vpop.f32.mrb[12].mxu0 }
 0x153   :  { %v441_v49 = vadd.f32 %v2114_v62, %v440_v48  ;;  %v442_v50 = vpop.f32.mrb[13].mxu0  ;;  %1789 = vmatprep.mubr.bf16.mxu1 %v737_v45 }
 0x154   :  { %v443_v52 = vpop.f32.mrb[14].mxu0 }
 0x155   :  { %v444_v54 = vadd.f32 %v2114_v62, %v443_v52  ;;  %v445_v55 = vpop.f32.mrb[15].mxu0  ;;  %v677_v56 = vmax.f32 %v441_v49, 0.0 }
 0x157   :  { %v678_v57 = vmax.f32 %v444_v54, 0.0  ;;  %655 = vmatmul.mubr.bf16.gmra.mrb[120].mxu0 %v243_v51 }
 0x158   :  { %662 = vmatprep.mubr.bf16.mxu0 %v246_v53 }
 0x159   :  { %v738_v60 = vpack.c.bf16 %v678_v57, %v677_v56 }
 0x15a   :  { %v448_v61 = vpop.f32.mrb[16].mxu0 }
 0x15b   :  { %v449_v63 = vadd.f32 %v2114_v62, %v448_v61  ;;  %v450_v0 = vpop.f32.mrb[17].mxu0  ;;  %1790 = vmatmul.mubr.bf16.gmra.mrb[4].mxu1 %v738_v60 }
 0x15c   :  { %v451_v2 = vpop.f32.mrb[18].mxu0 }
 0x15d   :  { %v452_v3 = vadd.f32 %v2114_v62, %v451_v2  ;;  %v453_v4 = vpop.f32.mrb[19].mxu0  ;;  %v679_v5 = vmax.f32 %v449_v63, 0.0 }
 0x15f   :  { %v680_v6 = vmax.f32 %v452_v3, 0.0  ;;  %663 = vmatmul.mubr.bf16.gmra.mrb[124].mxu0 %v245_v1 }
 0x161   :  { %v739_v7 = vpack.c.bf16 %v680_v6, %v679_v5 }
 0x162   :  { %v456_v8 = vpop.f32.mrb[20].mxu0 }
 0x163   :  { %v457_v9 = vadd.f32 %v2114_v62, %v456_v8  ;;  %v458_v10 = vpop.f32.mrb[21].mxu0  ;;  %1793 = vmatprep.mubr.bf16.mxu1 %v739_v7 }
 0x164   :  { %v459_v11 = vpop.f32.mrb[22].mxu0 }
 0x165   :  { %v460_v12 = vadd.f32 %v2114_v62, %v459_v11  ;;  %v461_v13 = vpop.f32.mrb[23].mxu0  ;;  %v681_v14 = vmax.f32 %v457_v9, 0.0 }
 0x167   :  { %v682_v15 = vmax.f32 %v460_v12, 0.0 }
 0x169   :  { %v740_v16 = vpack.c.bf16 %v682_v15, %v681_v14 }
 0x16a   :  { %v464_v17 = vpop.f32.mrb[24].mxu0 }
 0x16b   :  { %v465_v18 = vadd.f32 %v2114_v62, %v464_v17  ;;  %v466_v19 = vpop.f32.mrb[25].mxu0  ;;  %1794 = vmatmul.mubr.bf16.gmra.mrb[8].mxu1 %v740_v16  ;;  %v1960_v17 = vld [vmem:[%s2603_s5] sm:$0xff]  }
 0x16c   :  { %v467_v20 = vpop.f32.mrb[26].mxu0  ;;  %1849 = vmatprep.subr.bf16.mxu1 %v1960_v17 }
 0x16d   :  { %v468_v21 = vadd.f32 %v2114_v62, %v467_v20  ;;  %v469_v22 = vpop.f32.mrb[27].mxu0  ;;  %v683_v23 = vmax.f32 %v465_v18, 0.0  ;;  %1850 = vmatpush3.bf16.msra.mxu1 %v1960_v17 }
 0x16f   :  { %v684_v24 = vmax.f32 %v468_v21, 0.0 }
 0x171   :  { %v741_v25 = vpack.c.bf16 %v684_v24, %v683_v23  ;;  %v1961_v24 = vld [vmem:[%s2603_s5 + $0x8] sm:$0xff]  }
 0x172   :  { %v472_v26 = vpop.f32.mrb[28].mxu0  ;;  %1851 = vmatprep.subr.bf16.mxu1 %v1961_v24 }
 0x173   :  { %v473_v27 = vadd.f32 %v2114_v62, %v472_v26  ;;  %v474_v28 = vpop.f32.mrb[29].mxu0  ;;  %1797 = vmatprep.mubr.bf16.mxu1 %v741_v25  ;;  %1852 = vmatpush3.bf16.msra.mxu1 %v1961_v24 }
 0x174   :  { %v475_v29 = vpop.f32.mrb[30].mxu0  ;;  %v1962_v28 = vld [vmem:[%s2603_s5 + $0x10] sm:$0xff]  }
 0x175   :  { %v476_v30 = vadd.f32 %v2114_v62, %v475_v29  ;;  %v477_v31 = vpop.f32.mrb[31].mxu0  ;;  %v685_v32 = vmax.f32 %v473_v27, 0.0  ;;  %1853 = vmatprep.subr.bf16.mxu1 %v1962_v28 }
 0x177   :  { %v686_v33 = vmax.f32 %v476_v30, 0.0  ;;  %1854 = vmatpush3.bf16.msra.mxu1 %v1962_v28 }
 0x179   :  { %v742_v34 = vpack.c.bf16 %v686_v33, %v685_v32 }
 0x17a   :  { %v480_v35 = vpop.f32.mrb[32].mxu0 }
 0x17b   :  { %v481_v36 = vadd.f32 %v2114_v62, %v480_v35  ;;  %v482_v37 = vpop.f32.mrb[33].mxu0  ;;  %1798 = vmatmul.mubr.bf16.gmra.mrb[12].mxu1 %v742_v34  ;;  %v1963_v35 = vld [vmem:[%s2603_s5 + $0x18] sm:$0xff]  }
 0x17c   :  { %v483_v38 = vpop.f32.mrb[34].mxu0  ;;  %1855 = vmatprep.subr.bf16.mxu1 %v1963_v35 }
 0x17d   :  { %v484_v39 = vadd.f32 %v2114_v62, %v483_v38  ;;  %v485_v40 = vpop.f32.mrb[35].mxu0  ;;  %v687_v41 = vmax.f32 %v481_v36, 0.0  ;;  %1856 = vmatpush3.bf16.msra.mxu1 %v1963_v35 }
 0x17f   :  { %v688_v42 = vmax.f32 %v484_v39, 0.0  ;;  %v1964_v39 = vld [vmem:[%s2603_s5 + $0x20] sm:$0xff]  }
 0x180   :  { %1857 = vmatprep.subr.bf16.mxu1 %v1964_v39 }
 0x181   :  { %v743_v43 = vpack.c.bf16 %v688_v42, %v687_v41  ;;  %1858 = vmatpush3.bf16.msra.mxu1 %v1964_v39 }
 0x182   :  { %v488_v44 = vpop.f32.mrb[36].mxu0 }
 0x183   :  { %v489_v45 = vadd.f32 %v2114_v62, %v488_v44  ;;  %v490_v46 = vpop.f32.mrb[37].mxu0  ;;  %1801 = vmatprep.mubr.bf16.mxu1 %v743_v43 }
 0x184   :  { %v491_v47 = vpop.f32.mrb[38].mxu0  ;;  %v1965_v46 = vld [vmem:[%s2603_s5 + $0x28] sm:$0xff]  }
 0x185   :  { %v492_v48 = vadd.f32 %v2114_v62, %v491_v47  ;;  %v493_v49 = vpop.f32.mrb[39].mxu0  ;;  %v689_v50 = vmax.f32 %v489_v45, 0.0  ;;  %1859 = vmatprep.subr.bf16.mxu1 %v1965_v46 }
 0x186   :  { %1860 = vmatpush3.bf16.msra.mxu1 %v1965_v46 }
 0x187   :  { %v690_v51 = vmax.f32 %v492_v48, 0.0 }
 0x189   :  { %v744_v52 = vpack.c.bf16 %v690_v51, %v689_v50  ;;  %v1966_v50 = vld [vmem:[%s2603_s5 + $0x30] sm:$0xff]  }
 0x18a   :  { %v496_v53 = vpop.f32.mrb[40].mxu0  ;;  %1861 = vmatprep.subr.bf16.mxu1 %v1966_v50 }
 0x18b   :  { %v497_v54 = vadd.f32 %v2114_v62, %v496_v53  ;;  %v498_v55 = vpop.f32.mrb[41].mxu0  ;;  %1802 = vmatmul.mubr.bf16.gmra.mrb[16].mxu1 %v744_v52 }
 0x18c   :  { %v499_v56 = vpop.f32.mrb[42].mxu0  ;;  %1862 = vmatpush3.bf16.msra.mxu1 %v1966_v50 }
 0x18d   :  { %v500_v57 = vadd.f32 %v2114_v62, %v499_v56  ;;  %v501_v58 = vpop.f32.mrb[43].mxu0  ;;  %v691_v59 = vmax.f32 %v497_v54, 0.0 }
 0x18f   :  { %v692_v60 = vmax.f32 %v500_v57, 0.0  ;;  %v1967_v57 = vld [vmem:[%s2603_s5 + $0x38] sm:$0xff]  }
 0x190   :  { %1863 = vmatprep.subr.bf16.mxu1 %v1967_v57 }
 0x191   :  { %v745_v61 = vpack.c.bf16 %v692_v60, %v691_v59  ;;  %1864 = vmatpush3.bf16.msra.mxu1 %v1967_v57 }
 0x192   :  { %v504_v63 = vpop.f32.mrb[44].mxu0 }
 0x193   :  { %v505_v0 = vadd.f32 %v2114_v62, %v504_v63  ;;  %v506_v1 = vpop.f32.mrb[45].mxu0  ;;  %1805 = vmatprep.mubr.bf16.mxu1 %v745_v61 }
 0x194   :  { %v507_v2 = vpop.f32.mrb[46].mxu0 }
 0x195   :  { %v508_v3 = vadd.f32 %v2114_v62, %v507_v2  ;;  %v509_v4 = vpop.f32.mrb[47].mxu0  ;;  %v693_v5 = vmax.f32 %v505_v0, 0.0 }
 0x197   :  { %v694_v6 = vmax.f32 %v508_v3, 0.0 }
 0x199   :  { %v746_v7 = vpack.c.bf16 %v694_v6, %v693_v5 }
 0x19a   :  { %v512_v8 = vpop.f32.mrb[48].mxu0 }
 0x19b   :  { %v513_v9 = vadd.f32 %v2114_v62, %v512_v8  ;;  %v514_v10 = vpop.f32.mrb[49].mxu0  ;;  %1806 = vmatmul.mubr.bf16.gmra.mrb[20].mxu1 %v746_v7 }
 0x19c   :  { %v515_v11 = vpop.f32.mrb[50].mxu0 }
 0x19d   :  { %v516_v12 = vadd.f32 %v2114_v62, %v515_v11  ;;  %v517_v13 = vpop.f32.mrb[51].mxu0  ;;  %v695_v14 = vmax.f32 %v513_v9, 0.0 }
 0x19f   :  { %v696_v15 = vmax.f32 %v516_v12, 0.0 }
 0x1a1   :  { %v747_v16 = vpack.c.bf16 %v696_v15, %v695_v14 }
 0x1a2   :  { %v520_v18 = vpop.f32.mrb[52].mxu0 }
 0x1a3   :  { %v521_v19 = vadd.f32 %v2114_v62, %v520_v18  ;;  %v522_v20 = vpop.f32.mrb[53].mxu0  ;;  %1809 = vmatprep.mubr.bf16.mxu1 %v747_v16 }
 0x1a4   :  { %v523_v21 = vpop.f32.mrb[54].mxu0 }
 0x1a5   :  { %v524_v22 = vadd.f32 %v2114_v62, %v523_v21  ;;  %v525_v23 = vpop.f32.mrb[55].mxu0  ;;  %v697_v25 = vmax.f32 %v521_v19, 0.0 }
 0x1a7   :  { %v698_v26 = vmax.f32 %v524_v22, 0.0 }
 0x1a9   :  { %v748_v27 = vpack.c.bf16 %v698_v26, %v697_v25 }
 0x1aa   :  { %v528_v29 = vpop.f32.mrb[56].mxu0 }
 0x1ab   :  { %v529_v30 = vadd.f32 %v2114_v62, %v528_v29  ;;  %v530_v31 = vpop.f32.mrb[57].mxu0  ;;  %1810 = vmatmul.mubr.bf16.gmra.mrb[24].mxu1 %v748_v27 }
 0x1ac   :  { %v531_v32 = vpop.f32.mrb[58].mxu0 }
 0x1ad   :  { %v532_v33 = vadd.f32 %v2114_v62, %v531_v32  ;;  %v533_v34 = vpop.f32.mrb[59].mxu0  ;;  %v699_v36 = vmax.f32 %v529_v30, 0.0 }
 0x1af   :  { %v700_v37 = vmax.f32 %v532_v33, 0.0 }
 0x1b1   :  { %v749_v38 = vpack.c.bf16 %v700_v37, %v699_v36 }
 0x1b2   :  { %v536_v40 = vpop.f32.mrb[60].mxu0 }
 0x1b3   :  { %v537_v41 = vadd.f32 %v2114_v62, %v536_v40  ;;  %v538_v42 = vpop.f32.mrb[61].mxu0  ;;  %1813 = vmatprep.mubr.bf16.mxu1 %v749_v38 }
 0x1b4   :  { %v539_v43 = vpop.f32.mrb[62].mxu0 }
 0x1b5   :  { %v540_v44 = vadd.f32 %v2114_v62, %v539_v43  ;;  %v541_v45 = vpop.f32.mrb[63].mxu0  ;;  %v701_v47 = vmax.f32 %v537_v41, 0.0 }
 0x1b7   :  { %v702_v48 = vmax.f32 %v540_v44, 0.0 }
 0x1b9   :  { %v750_v49 = vpack.c.bf16 %v702_v48, %v701_v47 }
 0x1ba   :  { %v544_v51 = vpop.f32.mrb[64].mxu0 }
 0x1bb   :  { %v545_v52 = vadd.f32 %v2114_v62, %v544_v51  ;;  %v546_v53 = vpop.f32.mrb[65].mxu0  ;;  %1814 = vmatmul.mubr.bf16.gmra.mrb[28].mxu1 %v750_v49 }
 0x1bc   :  { %v547_v54 = vpop.f32.mrb[66].mxu0 }
 0x1bd   :  { %v548_v55 = vadd.f32 %v2114_v62, %v547_v54  ;;  %v549_v56 = vpop.f32.mrb[67].mxu0  ;;  %v703_v58 = vmax.f32 %v545_v52, 0.0 }
 0x1bf   :  { %v704_v59 = vmax.f32 %v548_v55, 0.0 }
 0x1c1   :  { %v751_v60 = vpack.c.bf16 %v704_v59, %v703_v58 }
 0x1c2   :  { %v552_v61 = vpop.f32.mrb[68].mxu0 }
 0x1c3   :  { %v553_v63 = vadd.f32 %v2114_v62, %v552_v61  ;;  %v554_v0 = vpop.f32.mrb[69].mxu0  ;;  %1817 = vmatprep.mubr.bf16.mxu1 %v751_v60 }
 0x1c4   :  { %v555_v1 = vpop.f32.mrb[70].mxu0 }
 0x1c5   :  { %v556_v2 = vadd.f32 %v2114_v62, %v555_v1  ;;  %v557_v3 = vpop.f32.mrb[71].mxu0  ;;  %v705_v4 = vmax.f32 %v553_v63, 0.0 }
 0x1c7   :  { %v706_v5 = vmax.f32 %v556_v2, 0.0 }
 0x1c9   :  { %v752_v6 = vpack.c.bf16 %v706_v5, %v705_v4 }
 0x1ca   :  { %v560_v7 = vpop.f32.mrb[72].mxu0 }
 0x1cb   :  { %v561_v8 = vadd.f32 %v2114_v62, %v560_v7  ;;  %v562_v9 = vpop.f32.mrb[73].mxu0  ;;  %1818 = vmatmul.mubr.bf16.gmra.mrb[32].mxu1 %v752_v6 }
 0x1cc   :  { %v563_v10 = vpop.f32.mrb[74].mxu0 }
 0x1cd   :  { %v564_v11 = vadd.f32 %v2114_v62, %v563_v10  ;;  %v565_v12 = vpop.f32.mrb[75].mxu0  ;;  %v707_v13 = vmax.f32 %v561_v8, 0.0 }
 0x1cf   :  { %v708_v14 = vmax.f32 %v564_v11, 0.0 }
 0x1d1   :  { %v753_v15 = vpack.c.bf16 %v708_v14, %v707_v13 }
 0x1d2   :  { %v568_v16 = vpop.f32.mrb[76].mxu0 }
 0x1d3   :  { %v569_v17 = vadd.f32 %v2114_v62, %v568_v16  ;;  %v570_v18 = vpop.f32.mrb[77].mxu0  ;;  %1821 = vmatprep.mubr.bf16.mxu1 %v753_v15 }
 0x1d4   :  { %v571_v19 = vpop.f32.mrb[78].mxu0 }
 0x1d5   :  { %v572_v20 = vadd.f32 %v2114_v62, %v571_v19  ;;  %v573_v21 = vpop.f32.mrb[79].mxu0  ;;  %v709_v22 = vmax.f32 %v569_v17, 0.0 }
 0x1d7   :  { %v710_v23 = vmax.f32 %v572_v20, 0.0 }
 0x1d9   :  { %v754_v24 = vpack.c.bf16 %v710_v23, %v709_v22 }
 0x1da   :  { %v576_v25 = vpop.f32.mrb[80].mxu0 }
 0x1db   :  { %v577_v26 = vadd.f32 %v2114_v62, %v576_v25  ;;  %v578_v27 = vpop.f32.mrb[81].mxu0  ;;  %1822 = vmatmul.mubr.bf16.gmra.mrb[36].mxu1 %v754_v24 }
 0x1dc   :  { %v579_v28 = vpop.f32.mrb[82].mxu0 }
 0x1dd   :  { %v580_v29 = vadd.f32 %v2114_v62, %v579_v28  ;;  %v581_v30 = vpop.f32.mrb[83].mxu0  ;;  %v711_v31 = vmax.f32 %v577_v26, 0.0 }
 0x1df   :  { %v712_v32 = vmax.f32 %v580_v29, 0.0 }
 0x1e1   :  { %v755_v33 = vpack.c.bf16 %v712_v32, %v711_v31 }
 0x1e2   :  { %v584_v34 = vpop.f32.mrb[84].mxu0 }
 0x1e3   :  { %v585_v35 = vadd.f32 %v2114_v62, %v584_v34  ;;  %v586_v36 = vpop.f32.mrb[85].mxu0  ;;  %1825 = vmatprep.mubr.bf16.mxu1 %v755_v33 }
 0x1e4   :  { %v587_v37 = vpop.f32.mrb[86].mxu0 }
 0x1e5   :  { %v588_v38 = vadd.f32 %v2114_v62, %v587_v37  ;;  %v589_v39 = vpop.f32.mrb[87].mxu0  ;;  %v713_v40 = vmax.f32 %v585_v35, 0.0 }
 0x1e7   :  { %v714_v41 = vmax.f32 %v588_v38, 0.0  ;;  %v2200_v38 = vld [vmem:[%s2602_s4] ss:$0 sm:$0xff] }
 0x1e9   :  { %v756_v42 = vpack.c.bf16 %v714_v41, %v713_v40 }
 0x1ea   :  { %v592_v43 = vpop.f32.mrb[88].mxu0 }
 0x1eb   :  { %v593_v44 = vadd.f32 %v2114_v62, %v592_v43  ;;  %v594_v45 = vpop.f32.mrb[89].mxu0  ;;  %1826 = vmatmul.mubr.bf16.gmra.mrb[40].mxu1 %v756_v42 }
 0x1ec   :  { %v595_v46 = vpop.f32.mrb[90].mxu0 }
 0x1ed   :  { %v596_v47 = vadd.f32 %v2114_v62, %v595_v46  ;;  %v597_v48 = vpop.f32.mrb[91].mxu0  ;;  %v715_v49 = vmax.f32 %v593_v44, 0.0 }
 0x1ef   :  { %v716_v50 = vmax.f32 %v596_v47, 0.0 }
 0x1f1   :  { %v757_v51 = vpack.c.bf16 %v716_v50, %v715_v49 }
 0x1f2   :  { %v600_v52 = vpop.f32.mrb[92].mxu0 }
 0x1f3   :  { %v601_v53 = vadd.f32 %v2114_v62, %v600_v52  ;;  %v602_v54 = vpop.f32.mrb[93].mxu0  ;;  %1829 = vmatprep.mubr.bf16.mxu1 %v757_v51 }
 0x1f4   :  { %v603_v55 = vpop.f32.mrb[94].mxu0 }
 0x1f5   :  { %v604_v56 = vadd.f32 %v2114_v62, %v603_v55  ;;  %v605_v57 = vpop.f32.mrb[95].mxu0  ;;  %v717_v58 = vmax.f32 %v601_v53, 0.0 }
 0x1f7   :  { %v718_v59 = vmax.f32 %v604_v56, 0.0 }
 0x1f9   :  { %v758_v60 = vpack.c.bf16 %v718_v59, %v717_v58 }
 0x1fa   :  { %v608_v61 = vpop.f32.mrb[96].mxu0 }
 0x1fb   :  { %v609_v63 = vadd.f32 %v2114_v62, %v608_v61  ;;  %v610_v0 = vpop.f32.mrb[97].mxu0  ;;  %1830 = vmatmul.mubr.bf16.gmra.mrb[44].mxu1 %v758_v60 }
 0x1fc   :  { %v611_v1 = vpop.f32.mrb[98].mxu0 }
 0x1fd   :  { %v612_v2 = vadd.f32 %v2114_v62, %v611_v1  ;;  %v613_v3 = vpop.f32.mrb[99].mxu0  ;;  %v719_v4 = vmax.f32 %v609_v63, 0.0 }
 0x1ff   :  { %v720_v5 = vmax.f32 %v612_v2, 0.0 }
 0x201   :  { %v759_v6 = vpack.c.bf16 %v720_v5, %v719_v4 }
 0x202   :  { %v616_v7 = vpop.f32.mrb[100].mxu0 }
 0x203   :  { %v617_v8 = vadd.f32 %v2114_v62, %v616_v7  ;;  %v618_v9 = vpop.f32.mrb[101].mxu0  ;;  %1833 = vmatprep.mubr.bf16.mxu1 %v759_v6 }
 0x204   :  { %v619_v10 = vpop.f32.mrb[102].mxu0 }
 0x205   :  { %v620_v11 = vadd.f32 %v2114_v62, %v619_v10  ;;  %v621_v12 = vpop.f32.mrb[103].mxu0  ;;  %v721_v13 = vmax.f32 %v617_v8, 0.0 }
 0x207   :  { %v722_v14 = vmax.f32 %v620_v11, 0.0 }
 0x209   :  { %v760_v15 = vpack.c.bf16 %v722_v14, %v721_v13 }
 0x20a   :  { %v624_v16 = vpop.f32.mrb[104].mxu0 }
 0x20b   :  { %v625_v17 = vadd.f32 %v2114_v62, %v624_v16  ;;  %v626_v18 = vpop.f32.mrb[105].mxu0  ;;  %1834 = vmatmul.mubr.bf16.gmra.mrb[48].mxu1 %v760_v15 }
 0x20c   :  { %v627_v19 = vpop.f32.mrb[106].mxu0 }
 0x20d   :  { %v628_v20 = vadd.f32 %v2114_v62, %v627_v19  ;;  %v629_v21 = vpop.f32.mrb[107].mxu0  ;;  %v723_v22 = vmax.f32 %v625_v17, 0.0 }
 0x20f   :  { %v724_v23 = vmax.f32 %v628_v20, 0.0 }
 0x211   :  { %v761_v24 = vpack.c.bf16 %v724_v23, %v723_v22 }
 0x212   :  { %v632_v25 = vpop.f32.mrb[108].mxu0 }
 0x213   :  { %v633_v26 = vadd.f32 %v2114_v62, %v632_v25  ;;  %v634_v27 = vpop.f32.mrb[109].mxu0  ;;  %1837 = vmatprep.mubr.bf16.mxu1 %v761_v24 }
 0x214   :  { %v635_v28 = vpop.f32.mrb[110].mxu0 }
 0x215   :  { %v636_v29 = vadd.f32 %v2114_v62, %v635_v28  ;;  %v637_v30 = vpop.f32.mrb[111].mxu0  ;;  %v725_v31 = vmax.f32 %v633_v26, 0.0 }
 0x217   :  { %v726_v32 = vmax.f32 %v636_v29, 0.0 }
 0x219   :  { %v762_v33 = vpack.c.bf16 %v726_v32, %v725_v31 }
 0x21a   :  { %v640_v34 = vpop.f32.mrb[112].mxu0 }
 0x21b   :  { %v641_v35 = vadd.f32 %v2114_v62, %v640_v34  ;;  %v642_v36 = vpop.f32.mrb[113].mxu0  ;;  %1838 = vmatmul.mubr.bf16.gmra.mrb[52].mxu1 %v762_v33 }
 0x21c   :  { %v643_v37 = vpop.f32.mrb[114].mxu0 }
 0x21d   :  { %v644_v39 = vadd.f32 %v2114_v62, %v643_v37  ;;  %v645_v40 = vpop.f32.mrb[115].mxu0  ;;  %v727_v42 = vmax.f32 %v641_v35, 0.0 }
 0x21e   :  { %v1787_v41 = vpop.f32.mrb[0].mxu1 }
 0x21f   :  { %v728_v43 = vmax.f32 %v644_v39, 0.0  ;;  %v881_v44 = vadd.f32 %v1787_v41, %v2200_v38  ;;  %v872_v45 = vpop.f32.mrb[1].mxu1 }
 0x220   :  { %v873_v46 = vadd.f32 %v2200_v38, %v872_v45  ;;  %v1788_v47 = vpop.f32.mrb[2].mxu1 }
 0x221   :  { %v763_v48 = vpack.c.bf16 %v728_v43, %v727_v42  ;;  %v884_v49 = vadd.f32 %v1788_v47, %v2200_v38  ;;  %v875_v50 = vpop.f32.mrb[3].mxu1  ;;  %v1129_v53 = vmax.f32 %v881_v44, 0.0 }
 0x222   :  { %v876_v51 = vadd.f32 %v2200_v38, %v875_v50  ;;  %v648_v52 = vpop.f32.mrb[116].mxu0  ;;  %v1127_v57 = vmax.f32 %v873_v46, 0.0 }
 0x223   :  { %v1130_v54 = vmax.f32 %v884_v49, 0.0  ;;  %v649_v55 = vadd.f32 %v2114_v62, %v648_v52  ;;  %v650_v56 = vpop.f32.mrb[117].mxu0  ;;  %1841 = vmatprep.mubr.bf16.mxu1 %v763_v48 }
 0x224   :  { %v1128_v58 = vmax.f32 %v876_v51, 0.0  ;;  %v651_v59 = vpop.f32.mrb[118].mxu0 }
 0x225   :  { %v1192_v60 = vpack.c.bf16 %v1130_v54, %v1129_v53  ;;  %v652_v61 = vadd.f32 %v2114_v62, %v651_v59  ;;  %v653_v63 = vpop.f32.mrb[119].mxu0  ;;  %v729_v1 = vmax.f32 %v649_v55, 0.0 }
 0x226   :  { %v1191_v0 = vpack.c.bf16 %v1128_v58, %v1127_v57 }
 0x227   :  { %v730_v2 = vmax.f32 %v652_v61, 0.0 }
 0x229   :  { %v764_v3 = vpack.c.bf16 %v730_v2, %v729_v1 }
 0x22a   :  { %v656_v4 = vpop.f32.mrb[120].mxu0 }
 0x22b   :  { %v657_v5 = vadd.f32 %v2114_v62, %v656_v4  ;;  %v658_v6 = vpop.f32.mrb[121].mxu0  ;;  %1842 = vmatmul.mubr.bf16.gmra.mrb[56].mxu1 %v764_v3 }
 0x22c   :  { %v659_v7 = vpop.f32.mrb[122].mxu0 }
 0x22d   :  { %v660_v8 = vadd.f32 %v2114_v62, %v659_v7  ;;  %v661_v9 = vpop.f32.mrb[123].mxu0  ;;  %v731_v11 = vmax.f32 %v657_v5, 0.0 }
 0x22e   :  { %v1791_v10 = vpop.f32.mrb[4].mxu1 }
 0x22f   :  { %v732_v12 = vmax.f32 %v660_v8, 0.0  ;;  %v897_v13 = vadd.f32 %v1791_v10, %v2200_v38  ;;  %v888_v14 = vpop.f32.mrb[5].mxu1 }
 0x230   :  { %v889_v15 = vadd.f32 %v2200_v38, %v888_v14  ;;  %v1792_v16 = vpop.f32.mrb[6].mxu1 }
 0x231   :  { %v765_v17 = vpack.c.bf16 %v732_v12, %v731_v11  ;;  %v900_v18 = vadd.f32 %v1792_v16, %v2200_v38  ;;  %v891_v19 = vpop.f32.mrb[7].mxu1  ;;  %v1133_v22 = vmax.f32 %v897_v13, 0.0 }
 0x232   :  { %v892_v20 = vadd.f32 %v2200_v38, %v891_v19  ;;  %v664_v21 = vpop.f32.mrb[124].mxu0  ;;  %v1131_v26 = vmax.f32 %v889_v15, 0.0 }
 0x233   :  { %v1134_v23 = vmax.f32 %v900_v18, 0.0  ;;  %v665_v24 = vadd.f32 %v2114_v62, %v664_v21  ;;  %v666_v25 = vpop.f32.mrb[125].mxu0  ;;  %1845 = vmatprep.mubr.bf16.mxu1 %v765_v17 }
 0x234   :  { %v1132_v27 = vmax.f32 %v892_v20, 0.0  ;;  %v667_v28 = vpop.f32.mrb[126].mxu0 }
 0x235   :  { %v1194_v29 = vpack.c.bf16 %v1134_v23, %v1133_v22  ;;  %v668_v30 = vadd.f32 %v2114_v62, %v667_v28  ;;  %v669_v31 = vpop.f32.mrb[127].mxu0  ;;  %v733_v33 = vmax.f32 %v665_v24, 0.0 }
 0x236   :  { %v1193_v32 = vpack.c.bf16 %v1132_v27, %v1131_v26 }
 0x237   :  { %v734_v34 = vmax.f32 %v668_v30, 0.0 }
 0x239   :  { %v766_v35 = vpack.c.bf16 %v734_v34, %v733_v33 }
 0x23b   :  { %1846 = vmatmul.mubr.bf16.gmra.mrb[60].mxu1 %v766_v35 }
 0x23c   :  { %1865 = vmatprep.mubr.bf16.mxu1 %v1191_v0 }
 0x23e   :  { %v1795_v36 = vpop.f32.mrb[8].mxu1 }
 0x23f   :  { %v913_v37 = vadd.f32 %v1795_v36, %v2200_v38  ;;  %v904_v39 = vpop.f32.mrb[9].mxu1 }
 0x240   :  { %v905_v40 = vadd.f32 %v2200_v38, %v904_v39  ;;  %v1796_v41 = vpop.f32.mrb[10].mxu1 }
 0x241   :  { %v916_v42 = vadd.f32 %v1796_v41, %v2200_v38  ;;  %v907_v43 = vpop.f32.mrb[11].mxu1  ;;  %v1137_v62 = vmax.f32 %v913_v37, 0.0 }
 0x242   :  { %v908_v44 = vadd.f32 %v2200_v38, %v907_v43  ;;  %v1135_v46 = vmax.f32 %v905_v40, 0.0 }
 0x243   :  { %v1138_v45 = vmax.f32 %v916_v42, 0.0  ;;  %1866 = vmatmul.mubr.bf16.vlgmr.msra.gmra.mrb[64].mxu1 %v1192_v60 }
 0x244   :  { %v1136_v47 = vmax.f32 %v908_v44, 0.0  ;;  %1869 = vmatprep.mubr.bf16.mxu1 %v1193_v32 }
 0x245   :  { %v1196_v48 = vpack.c.bf16 %v1138_v45, %v1137_v62 }
 0x246   :  { %v1195_v49 = vpack.c.bf16 %v1136_v47, %v1135_v46 }
 0x24b   :  { %1870 = vmatmul.mubr.bf16.gmra.mrb[68].mxu1 %v1194_v29 }
 0x24c   :  { %1873 = vmatprep.mubr.bf16.mxu1 %v1195_v49 }
 0x24e   :  { %v1799_v50 = vpop.f32.mrb[12].mxu1 }
 0x24f   :  { %v929_v51 = vadd.f32 %v1799_v50, %v2200_v38  ;;  %v920_v52 = vpop.f32.mrb[13].mxu1 }
 0x250   :  { %v921_v53 = vadd.f32 %v2200_v38, %v920_v52  ;;  %v1800_v54 = vpop.f32.mrb[14].mxu1 }
 0x251   :  { %v932_v55 = vadd.f32 %v1800_v54, %v2200_v38  ;;  %v923_v56 = vpop.f32.mrb[15].mxu1  ;;  %v1141_v58 = vmax.f32 %v929_v51, 0.0 }
 0x252   :  { %v924_v57 = vadd.f32 %v2200_v38, %v923_v56  ;;  %v1139_v60 = vmax.f32 %v921_v53, 0.0 }
 0x253   :  { %v1142_v59 = vmax.f32 %v932_v55, 0.0  ;;  %1874 = vmatmul.mubr.bf16.gmra.mrb[72].mxu1 %v1196_v48 }
 0x254   :  { %v1140_v61 = vmax.f32 %v924_v57, 0.0 }
 0x255   :  { %v1198_v63 = vpack.c.bf16 %v1142_v59, %v1141_v58 }
 0x256   :  { %v1197_v0 = vpack.c.bf16 %v1140_v61, %v1139_v60 }
 0x258   :  { %1877 = vmatprep.mubr.bf16.mxu1 %v1197_v0 }
 0x25b   :  { %1878 = vmatmul.mubr.bf16.gmra.mrb[76].mxu1 %v1198_v63 }
 0x25e   :  { %v1803_v1 = vpop.f32.mrb[16].mxu1 }
 0x25f   :  { %v945_v2 = vadd.f32 %v1803_v1, %v2200_v38  ;;  %v936_v3 = vpop.f32.mrb[17].mxu1 }
 0x260   :  { %v937_v4 = vadd.f32 %v2200_v38, %v936_v3  ;;  %v1804_v5 = vpop.f32.mrb[18].mxu1 }
 0x261   :  { %v948_v6 = vadd.f32 %v1804_v5, %v2200_v38  ;;  %v939_v7 = vpop.f32.mrb[19].mxu1  ;;  %v1145_v9 = vmax.f32 %v945_v2, 0.0 }
 0x262   :  { %v940_v8 = vadd.f32 %v2200_v38, %v939_v7  ;;  %v1143_v11 = vmax.f32 %v937_v4, 0.0 }
 0x263   :  { %v1146_v10 = vmax.f32 %v948_v6, 0.0 }
 0x264   :  { %v1144_v12 = vmax.f32 %v940_v8, 0.0 }
 0x265   :  { %v1200_v13 = vpack.c.bf16 %v1146_v10, %v1145_v9 }
 0x266   :  { %v1199_v14 = vpack.c.bf16 %v1144_v12, %v1143_v11 }
 0x268   :  { %1881 = vmatprep.mubr.bf16.mxu1 %v1199_v14 }
 0x269   :  { %1882 = vmatmul.mubr.bf16.gmra.mrb[80].mxu1 %v1200_v13 }
 0x26e   :  { %v1807_v15 = vpop.f32.mrb[20].mxu1 }
 0x26f   :  { %v961_v16 = vadd.f32 %v1807_v15, %v2200_v38  ;;  %v952_v17 = vpop.f32.mrb[21].mxu1 }
 0x270   :  { %v953_v18 = vadd.f32 %v2200_v38, %v952_v17  ;;  %v1808_v19 = vpop.f32.mrb[22].mxu1 }
 0x271   :  { %v964_v20 = vadd.f32 %v1808_v19, %v2200_v38  ;;  %v955_v21 = vpop.f32.mrb[23].mxu1  ;;  %v1149_v23 = vmax.f32 %v961_v16, 0.0 }
 0x272   :  { %v956_v22 = vadd.f32 %v2200_v38, %v955_v21  ;;  %v1147_v25 = vmax.f32 %v953_v18, 0.0 }
 0x273   :  { %v1150_v24 = vmax.f32 %v964_v20, 0.0 }
 0x274   :  { %v1148_v26 = vmax.f32 %v956_v22, 0.0 }
 0x275   :  { %v1202_v27 = vpack.c.bf16 %v1150_v24, %v1149_v23 }
 0x276   :  { %v1201_v28 = vpack.c.bf16 %v1148_v26, %v1147_v25 }
 0x278   :  { %1885 = vmatprep.mubr.bf16.mxu1 %v1201_v28 }
 0x279   :  { %1886 = vmatmul.mubr.bf16.gmra.mrb[84].mxu1 %v1202_v27 }
 0x27e   :  { %v1811_v29 = vpop.f32.mrb[24].mxu1 }
 0x27f   :  { %v977_v30 = vadd.f32 %v1811_v29, %v2200_v38  ;;  %v968_v31 = vpop.f32.mrb[25].mxu1 }
 0x280   :  { %v969_v32 = vadd.f32 %v2200_v38, %v968_v31  ;;  %v1812_v33 = vpop.f32.mrb[26].mxu1 }
 0x281   :  { %v980_v34 = vadd.f32 %v1812_v33, %v2200_v38  ;;  %v971_v35 = vpop.f32.mrb[27].mxu1  ;;  %v1153_v37 = vmax.f32 %v977_v30, 0.0 }
 0x282   :  { %v972_v36 = vadd.f32 %v2200_v38, %v971_v35  ;;  %v1151_v40 = vmax.f32 %v969_v32, 0.0 }
 0x283   :  { %v1154_v39 = vmax.f32 %v980_v34, 0.0 }
 0x284   :  { %v1152_v41 = vmax.f32 %v972_v36, 0.0 }
 0x285   :  { %v1204_v42 = vpack.c.bf16 %v1154_v39, %v1153_v37 }
 0x286   :  { %v1203_v43 = vpack.c.bf16 %v1152_v41, %v1151_v40 }
 0x288   :  { %1889 = vmatprep.mubr.bf16.mxu1 %v1203_v43 }
 0x289   :  { %1890 = vmatmul.mubr.bf16.gmra.mrb[88].mxu1 %v1204_v42 }
 0x28e   :  { %v1815_v44 = vpop.f32.mrb[28].mxu1 }
 0x28f   :  { %v993_v62 = vadd.f32 %v1815_v44, %v2200_v38  ;;  %v984_v45 = vpop.f32.mrb[29].mxu1 }
 0x290   :  { %v985_v46 = vadd.f32 %v2200_v38, %v984_v45  ;;  %v1816_v47 = vpop.f32.mrb[30].mxu1 }
 0x291   :  { %v996_v48 = vadd.f32 %v1816_v47, %v2200_v38  ;;  %v987_v49 = vpop.f32.mrb[31].mxu1  ;;  %v1157_v51 = vmax.f32 %v993_v62, 0.0 }
 0x292   :  { %v988_v50 = vadd.f32 %v2200_v38, %v987_v49  ;;  %v1155_v53 = vmax.f32 %v985_v46, 0.0 }
 0x293   :  { %v1158_v52 = vmax.f32 %v996_v48, 0.0 }
 0x294   :  { %v1156_v54 = vmax.f32 %v988_v50, 0.0 }
 0x295   :  { %v1206_v55 = vpack.c.bf16 %v1158_v52, %v1157_v51 }
 0x296   :  { %v1205_v56 = vpack.c.bf16 %v1156_v54, %v1155_v53 }
 0x298   :  { %1893 = vmatprep.mubr.bf16.mxu1 %v1205_v56 }
 0x299   :  { %1894 = vmatmul.mubr.bf16.gmra.mrb[92].mxu1 %v1206_v55 }
 0x29e   :  { %v1819_v57 = vpop.f32.mrb[32].mxu1 }
 0x29f   :  { %v1009_v58 = vadd.f32 %v1819_v57, %v2200_v38  ;;  %v1000_v59 = vpop.f32.mrb[33].mxu1 }
 0x2a0   :  { %v1001_v60 = vadd.f32 %v2200_v38, %v1000_v59  ;;  %v1820_v61 = vpop.f32.mrb[34].mxu1 }
 0x2a1   :  { %v1012_v63 = vadd.f32 %v1820_v61, %v2200_v38  ;;  %v1003_v0 = vpop.f32.mrb[35].mxu1  ;;  %v1161_v2 = vmax.f32 %v1009_v58, 0.0 }
 0x2a2   :  { %v1004_v1 = vadd.f32 %v2200_v38, %v1003_v0  ;;  %v1159_v4 = vmax.f32 %v1001_v60, 0.0 }
 0x2a3   :  { %v1162_v3 = vmax.f32 %v1012_v63, 0.0 }
 0x2a4   :  { %v1160_v5 = vmax.f32 %v1004_v1, 0.0 }
 0x2a5   :  { %v1208_v6 = vpack.c.bf16 %v1162_v3, %v1161_v2 }
 0x2a6   :  { %v1207_v7 = vpack.c.bf16 %v1160_v5, %v1159_v4 }
 0x2a8   :  { %1897 = vmatprep.mubr.bf16.mxu1 %v1207_v7 }
 0x2a9   :  { %1898 = vmatmul.mubr.bf16.gmra.mrb[96].mxu1 %v1208_v6 }
 0x2ae   :  { %v1823_v8 = vpop.f32.mrb[36].mxu1 }
 0x2af   :  { %v1025_v9 = vadd.f32 %v1823_v8, %v2200_v38  ;;  %v1016_v10 = vpop.f32.mrb[37].mxu1 }
 0x2b0   :  { %v1017_v11 = vadd.f32 %v2200_v38, %v1016_v10  ;;  %v1824_v12 = vpop.f32.mrb[38].mxu1 }
 0x2b1   :  { %v1028_v13 = vadd.f32 %v1824_v12, %v2200_v38  ;;  %v1019_v14 = vpop.f32.mrb[39].mxu1  ;;  %v1165_v16 = vmax.f32 %v1025_v9, 0.0 }
 0x2b2   :  { %v1020_v15 = vadd.f32 %v2200_v38, %v1019_v14  ;;  %v1163_v18 = vmax.f32 %v1017_v11, 0.0 }
 0x2b3   :  { %v1166_v17 = vmax.f32 %v1028_v13, 0.0 }
 0x2b4   :  { %v1164_v19 = vmax.f32 %v1020_v15, 0.0 }
 0x2b5   :  { %v1210_v20 = vpack.c.bf16 %v1166_v17, %v1165_v16 }
 0x2b6   :  { %v1209_v21 = vpack.c.bf16 %v1164_v19, %v1163_v18 }
 0x2b8   :  { %1901 = vmatprep.mubr.bf16.mxu1 %v1209_v21 }
 0x2b9   :  { %1902 = vmatmul.mubr.bf16.gmra.mrb[100].mxu1 %v1210_v20 }
 0x2be   :  { %v1827_v22 = vpop.f32.mrb[40].mxu1 }
 0x2bf   :  { %v1041_v23 = vadd.f32 %v1827_v22, %v2200_v38  ;;  %v1032_v24 = vpop.f32.mrb[41].mxu1 }
 0x2c0   :  { %v1033_v25 = vadd.f32 %v2200_v38, %v1032_v24  ;;  %v1828_v26 = vpop.f32.mrb[42].mxu1 }
 0x2c1   :  { %v1044_v27 = vadd.f32 %v1828_v26, %v2200_v38  ;;  %v1035_v28 = vpop.f32.mrb[43].mxu1  ;;  %v1169_v30 = vmax.f32 %v1041_v23, 0.0 }
 0x2c2   :  { %v1036_v29 = vadd.f32 %v2200_v38, %v1035_v28  ;;  %v1167_v32 = vmax.f32 %v1033_v25, 0.0 }
 0x2c3   :  { %v1170_v31 = vmax.f32 %v1044_v27, 0.0 }
 0x2c4   :  { %v1168_v33 = vmax.f32 %v1036_v29, 0.0 }
 0x2c5   :  { %v1212_v34 = vpack.c.bf16 %v1170_v31, %v1169_v30 }
 0x2c6   :  { %v1211_v35 = vpack.c.bf16 %v1168_v33, %v1167_v32 }
 0x2c8   :  { %1905 = vmatprep.mubr.bf16.mxu1 %v1211_v35 }
 0x2c9   :  { %1906 = vmatmul.mubr.bf16.gmra.mrb[104].mxu1 %v1212_v34 }
 0x2ce   :  { %v1831_v36 = vpop.f32.mrb[44].mxu1 }
 0x2cf   :  { %v1057_v37 = vadd.f32 %v1831_v36, %v2200_v38  ;;  %v1048_v39 = vpop.f32.mrb[45].mxu1 }
 0x2d0   :  { %v1049_v40 = vadd.f32 %v2200_v38, %v1048_v39  ;;  %v1832_v41 = vpop.f32.mrb[46].mxu1 }
 0x2d1   :  { %v1060_v42 = vadd.f32 %v1832_v41, %v2200_v38  ;;  %v1051_v43 = vpop.f32.mrb[47].mxu1  ;;  %v1173_v62 = vmax.f32 %v1057_v37, 0.0 }
 0x2d2   :  { %v1052_v44 = vadd.f32 %v2200_v38, %v1051_v43  ;;  %v1171_v46 = vmax.f32 %v1049_v40, 0.0 }
 0x2d3   :  { %v1174_v45 = vmax.f32 %v1060_v42, 0.0  ;;  %v2276_v42 = vld [vmem:[%s2604_s6] ss:$0 sm:$0xff] }
 0x2d4   :  { %v1172_v47 = vmax.f32 %v1052_v44, 0.0 }
 0x2d5   :  { %v1214_v48 = vpack.c.bf16 %v1174_v45, %v1173_v62 }
 0x2d6   :  { %v1213_v49 = vpack.c.bf16 %v1172_v47, %v1171_v46 }
 0x2d8   :  { %1909 = vmatprep.mubr.bf16.mxu1 %v1213_v49 }
 0x2d9   :  { %1910 = vmatmul.mubr.bf16.gmra.mrb[108].mxu1 %v1214_v48 }
 0x2de   :  { %v1835_v50 = vpop.f32.mrb[48].mxu1 }
 0x2df   :  { %v1073_v51 = vadd.f32 %v1835_v50, %v2200_v38  ;;  %v1064_v52 = vpop.f32.mrb[49].mxu1 }
 0x2e0   :  { %v1065_v53 = vadd.f32 %v2200_v38, %v1064_v52  ;;  %v1836_v54 = vpop.f32.mrb[50].mxu1 }
 0x2e1   :  { %v1076_v55 = vadd.f32 %v1836_v54, %v2200_v38  ;;  %v1067_v56 = vpop.f32.mrb[51].mxu1  ;;  %v1177_v58 = vmax.f32 %v1073_v51, 0.0 }
 0x2e2   :  { %v1068_v57 = vadd.f32 %v2200_v38, %v1067_v56  ;;  %v1175_v60 = vmax.f32 %v1065_v53, 0.0 }
 0x2e3   :  { %v1178_v59 = vmax.f32 %v1076_v55, 0.0 }
 0x2e4   :  { %v1176_v61 = vmax.f32 %v1068_v57, 0.0 }
 0x2e5   :  { %v1216_v63 = vpack.c.bf16 %v1178_v59, %v1177_v58 }
 0x2e6   :  { %v1215_v0 = vpack.c.bf16 %v1176_v61, %v1175_v60 }
 0x2e8   :  { %1913 = vmatprep.mubr.bf16.mxu1 %v1215_v0 }
 0x2e9   :  { %1914 = vmatmul.mubr.bf16.gmra.mrb[112].mxu1 %v1216_v63 }
 0x2ee   :  { %v1839_v1 = vpop.f32.mrb[52].mxu1 }
 0x2ef   :  { %v1089_v2 = vadd.f32 %v1839_v1, %v2200_v38  ;;  %v1080_v3 = vpop.f32.mrb[53].mxu1 }
 0x2f0   :  { %v1081_v4 = vadd.f32 %v2200_v38, %v1080_v3  ;;  %v1840_v5 = vpop.f32.mrb[54].mxu1 }
 0x2f1   :  { %v1092_v6 = vadd.f32 %v1840_v5, %v2200_v38  ;;  %v1083_v7 = vpop.f32.mrb[55].mxu1  ;;  %v1181_v9 = vmax.f32 %v1089_v2, 0.0 }
 0x2f2   :  { %v1084_v8 = vadd.f32 %v2200_v38, %v1083_v7  ;;  %v1179_v11 = vmax.f32 %v1081_v4, 0.0 }
 0x2f3   :  { %v1182_v10 = vmax.f32 %v1092_v6, 0.0 }
 0x2f4   :  { %v1180_v12 = vmax.f32 %v1084_v8, 0.0 }
 0x2f5   :  { %v1218_v13 = vpack.c.bf16 %v1182_v10, %v1181_v9 }
 0x2f6   :  { %v1217_v14 = vpack.c.bf16 %v1180_v12, %v1179_v11 }
 0x2f8   :  { %1917 = vmatprep.mubr.bf16.mxu1 %v1217_v14 }
 0x2f9   :  { %1918 = vmatmul.mubr.bf16.gmra.mrb[116].mxu1 %v1218_v13 }
 0x2fe   :  { %v1843_v15 = vpop.f32.mrb[56].mxu1 }
 0x2ff   :  { %v1105_v16 = vadd.f32 %v1843_v15, %v2200_v38  ;;  %v1096_v17 = vpop.f32.mrb[57].mxu1 }
 0x300   :  { %v1097_v18 = vadd.f32 %v2200_v38, %v1096_v17  ;;  %v1844_v19 = vpop.f32.mrb[58].mxu1 }
 0x301   :  { %v1108_v20 = vadd.f32 %v1844_v19, %v2200_v38  ;;  %v1099_v21 = vpop.f32.mrb[59].mxu1  ;;  %v1185_v23 = vmax.f32 %v1105_v16, 0.0 }
 0x302   :  { %v1100_v22 = vadd.f32 %v2200_v38, %v1099_v21  ;;  %v1183_v25 = vmax.f32 %v1097_v18, 0.0 }
 0x303   :  { %v1186_v24 = vmax.f32 %v1108_v20, 0.0 }
 0x304   :  { %v1184_v26 = vmax.f32 %v1100_v22, 0.0 }
 0x305   :  { %v1220_v27 = vpack.c.bf16 %v1186_v24, %v1185_v23 }
 0x306   :  { %v1219_v28 = vpack.c.bf16 %v1184_v26, %v1183_v25 }
 0x308   :  { %1921 = vmatprep.mubr.bf16.mxu1 %v1219_v28 }
 0x309   :  { %1922 = vmatmul.mubr.bf16.gmra.mrb[120].mxu1 %v1220_v27 }
 0x30e   :  { %v1847_v29 = vpop.f32.mrb[60].mxu1 }
 0x30f   :  { %v1121_v30 = vadd.f32 %v1847_v29, %v2200_v38  ;;  %v1112_v31 = vpop.f32.mrb[61].mxu1 }
 0x310   :  { %v1113_v32 = vadd.f32 %v2200_v38, %v1112_v31  ;;  %v1848_v33 = vpop.f32.mrb[62].mxu1 }
 0x311   :  { %v1124_v34 = vadd.f32 %v1848_v33, %v2200_v38  ;;  %v1115_v35 = vpop.f32.mrb[63].mxu1  ;;  %v1189_v37 = vmax.f32 %v1121_v30, 0.0 }
 0x312   :  { %v1116_v36 = vadd.f32 %v2200_v38, %v1115_v35  ;;  %v1187_v40 = vmax.f32 %v1113_v32, 0.0 }
 0x313   :  { %v1190_v39 = vmax.f32 %v1124_v34, 0.0 }
 0x314   :  { %v1188_v41 = vmax.f32 %v1116_v36, 0.0 }
 0x315   :  { %v1222_v43 = vpack.c.bf16 %v1190_v39, %v1189_v37 }
 0x316   :  { %v1221_v44 = vpack.c.bf16 %v1188_v41, %v1187_v40  ;;  %v1867_v62 = vpop.f32.mrb[64].mxu1 }
 0x317   :  { %v1337_v45 = vadd.f32 %v1867_v62, %v2276_v42  ;;  %v1328_v46 = vpop.f32.mrb[65].mxu1 }
 0x318   :  { %v1329_v47 = vadd.f32 %v2276_v42, %v1328_v46  ;;  %v1868_v48 = vpop.f32.mrb[66].mxu1  ;;  %1925 = vmatprep.mubr.bf16.mxu1 %v1221_v44 }
 0x319   :  { %1586 = vst.msk [vmem:[%s2605_s7 + $0x10] sm:$0xff] %vm1583_vm0, %v1337_v45  ;;  %v1340_v38 = vadd.f32 %v1868_v48, %v2276_v42  ;;  %v1331_v49 = vpop.f32.mrb[67].mxu1  ;;  %1926 = vmatmul.mubr.bf16.gmra.mrb[124].mxu1 %v1222_v43 }
 0x31a   :  { %1584 = vst.msk [vmem:[%s2605_s7] sm:$0xff] %vm1583_vm0, %v1329_v47  ;;  %v1332_v50 = vadd.f32 %v2276_v42, %v1331_v49 }
 0x31b   :  { %1587 = vst.msk [vmem:[%s2605_s7 + $0x18] sm:$0xff] %vm1583_vm0, %v1340_v38 }
 0x31c   :  { %1585 = vst.msk [vmem:[%s2605_s7 + $0x8] sm:$0xff] %vm1583_vm0, %v1332_v50 }
 0x31e   :  { %v1871_v51 = vpop.f32.mrb[68].mxu1 }
 0x31f   :  { %v1353_v52 = vadd.f32 %v1871_v51, %v2276_v42  ;;  %v1344_v53 = vpop.f32.mrb[69].mxu1 }
 0x320   :  { %v1345_v54 = vadd.f32 %v2276_v42, %v1344_v53  ;;  %v1872_v55 = vpop.f32.mrb[70].mxu1 }
 0x321   :  { %1590 = vst.msk [vmem:[%s2605_s7 + $0x30] sm:$0xff] %vm1583_vm0, %v1353_v52  ;;  %v1356_v56 = vadd.f32 %v1872_v55, %v2276_v42  ;;  %v1347_v57 = vpop.f32.mrb[71].mxu1 }
 0x322   :  { %1588 = vst.msk [vmem:[%s2605_s7 + $0x20] sm:$0xff] %vm1583_vm0, %v1345_v54  ;;  %v1348_v58 = vadd.f32 %v2276_v42, %v1347_v57 }
 0x323   :  { %1591 = vst.msk [vmem:[%s2605_s7 + $0x38] sm:$0xff] %vm1583_vm0, %v1356_v56 }
 0x324   :  { %1589 = vst.msk [vmem:[%s2605_s7 + $0x28] sm:$0xff] %vm1583_vm0, %v1348_v58 }
 0x326   :  { %v1875_v59 = vpop.f32.mrb[72].mxu1 }
 0x327   :  { %v1369_v60 = vadd.f32 %v1875_v59, %v2276_v42  ;;  %v1360_v61 = vpop.f32.mrb[73].mxu1 }
 0x328   :  { %v1361_v63 = vadd.f32 %v2276_v42, %v1360_v61  ;;  %v1876_v0 = vpop.f32.mrb[74].mxu1 }
 0x329   :  { %1594 = vst.msk [vmem:[%s2605_s7 + $0x50] sm:$0xff] %vm1583_vm0, %v1369_v60  ;;  %v1372_v1 = vadd.f32 %v1876_v0, %v2276_v42  ;;  %v1363_v2 = vpop.f32.mrb[75].mxu1 }
 0x32a   :  { %1592 = vst.msk [vmem:[%s2605_s7 + $0x40] sm:$0xff] %vm1583_vm0, %v1361_v63  ;;  %v1364_v3 = vadd.f32 %v2276_v42, %v1363_v2 }
 0x32b   :  { %1595 = vst.msk [vmem:[%s2605_s7 + $0x58] sm:$0xff] %vm1583_vm0, %v1372_v1 }
 0x32c   :  { %1593 = vst.msk [vmem:[%s2605_s7 + $0x48] sm:$0xff] %vm1583_vm0, %v1364_v3 }
 0x32e   :  { %v1879_v4 = vpop.f32.mrb[76].mxu1 }
 0x32f   :  { %v1385_v5 = vadd.f32 %v1879_v4, %v2276_v42  ;;  %v1376_v6 = vpop.f32.mrb[77].mxu1 }
 0x330   :  { %v1377_v7 = vadd.f32 %v2276_v42, %v1376_v6  ;;  %v1880_v8 = vpop.f32.mrb[78].mxu1 }
 0x331   :  { %1598 = vst.msk [vmem:[%s2605_s7 + $0x70] sm:$0xff] %vm1583_vm0, %v1385_v5  ;;  %v1388_v9 = vadd.f32 %v1880_v8, %v2276_v42  ;;  %v1379_v10 = vpop.f32.mrb[79].mxu1 }
 0x332   :  { %1596 = vst.msk [vmem:[%s2605_s7 + $0x60] sm:$0xff] %vm1583_vm0, %v1377_v7  ;;  %v1380_v11 = vadd.f32 %v2276_v42, %v1379_v10 }
 0x333   :  { %1599 = vst.msk [vmem:[%s2605_s7 + $0x78] sm:$0xff] %vm1583_vm0, %v1388_v9 }
 0x334   :  { %1597 = vst.msk [vmem:[%s2605_s7 + $0x68] sm:$0xff] %vm1583_vm0, %v1380_v11 }
 0x33c   :  { %v1883_v12 = vpop.f32.mrb[80].mxu1 }
 0x33d   :  { %v1401_v13 = vadd.f32 %v1883_v12, %v2276_v42  ;;  %v1392_v14 = vpop.f32.mrb[81].mxu1 }
 0x33e   :  { %v1393_v15 = vadd.f32 %v2276_v42, %v1392_v14  ;;  %v1884_v16 = vpop.f32.mrb[82].mxu1 }
 0x33f   :  { %1602 = vst.msk [vmem:[%s2605_s7 + $0x90] sm:$0xff] %vm1583_vm0, %v1401_v13  ;;  %v1404_v17 = vadd.f32 %v1884_v16, %v2276_v42  ;;  %v1395_v18 = vpop.f32.mrb[83].mxu1 }
 0x340   :  { %1600 = vst.msk [vmem:[%s2605_s7 + $0x80] sm:$0xff] %vm1583_vm0, %v1393_v15  ;;  %v1396_v19 = vadd.f32 %v2276_v42, %v1395_v18 }
 0x341   :  { %1603 = vst.msk [vmem:[%s2605_s7 + $0x98] sm:$0xff] %vm1583_vm0, %v1404_v17 }
 0x342   :  { %1601 = vst.msk [vmem:[%s2605_s7 + $0x88] sm:$0xff] %vm1583_vm0, %v1396_v19 }
 0x34c   :  { %v1887_v20 = vpop.f32.mrb[84].mxu1 }
 0x34d   :  { %v1417_v21 = vadd.f32 %v1887_v20, %v2276_v42  ;;  %v1408_v22 = vpop.f32.mrb[85].mxu1 }
 0x34e   :  { %v1409_v23 = vadd.f32 %v2276_v42, %v1408_v22  ;;  %v1888_v24 = vpop.f32.mrb[86].mxu1 }
 0x34f   :  { %1606 = vst.msk [vmem:[%s2605_s7 + $0xb0] sm:$0xff] %vm1583_vm0, %v1417_v21  ;;  %v1420_v25 = vadd.f32 %v1888_v24, %v2276_v42  ;;  %v1411_v26 = vpop.f32.mrb[87].mxu1 }
 0x350   :  { %1604 = vst.msk [vmem:[%s2605_s7 + $0xa0] sm:$0xff] %vm1583_vm0, %v1409_v23  ;;  %v1412_v27 = vadd.f32 %v2276_v42, %v1411_v26 }
 0x351   :  { %1607 = vst.msk [vmem:[%s2605_s7 + $0xb8] sm:$0xff] %vm1583_vm0, %v1420_v25 }
 0x352   :  { %1605 = vst.msk [vmem:[%s2605_s7 + $0xa8] sm:$0xff] %vm1583_vm0, %v1412_v27 }
 0x35c   :  { %v1891_v28 = vpop.f32.mrb[88].mxu1 }
 0x35d   :  { %v1433_v29 = vadd.f32 %v1891_v28, %v2276_v42  ;;  %v1424_v30 = vpop.f32.mrb[89].mxu1 }
 0x35e   :  { %v1425_v31 = vadd.f32 %v2276_v42, %v1424_v30  ;;  %v1892_v32 = vpop.f32.mrb[90].mxu1 }
 0x35f   :  { %1610 = vst.msk [vmem:[%s2605_s7 + $0xd0] sm:$0xff] %vm1583_vm0, %v1433_v29  ;;  %v1436_v33 = vadd.f32 %v1892_v32, %v2276_v42  ;;  %v1427_v34 = vpop.f32.mrb[91].mxu1 }
 0x360   :  { %1608 = vst.msk [vmem:[%s2605_s7 + $0xc0] sm:$0xff] %vm1583_vm0, %v1425_v31  ;;  %v1428_v35 = vadd.f32 %v2276_v42, %v1427_v34 }
 0x361   :  { %1611 = vst.msk [vmem:[%s2605_s7 + $0xd8] sm:$0xff] %vm1583_vm0, %v1436_v33 }
 0x362   :  { %1609 = vst.msk [vmem:[%s2605_s7 + $0xc8] sm:$0xff] %vm1583_vm0, %v1428_v35 }
 0x36c   :  { %v1895_v36 = vpop.f32.mrb[92].mxu1 }
 0x36d   :  { %v1449_v37 = vadd.f32 %v1895_v36, %v2276_v42  ;;  %v1440_v39 = vpop.f32.mrb[93].mxu1 }
 0x36e   :  { %v1441_v40 = vadd.f32 %v2276_v42, %v1440_v39  ;;  %v1896_v41 = vpop.f32.mrb[94].mxu1 }
 0x36f   :  { %1614 = vst.msk [vmem:[%s2605_s7 + $0xf0] sm:$0xff] %vm1583_vm0, %v1449_v37  ;;  %v1452_v43 = vadd.f32 %v1896_v41, %v2276_v42  ;;  %v1443_v44 = vpop.f32.mrb[95].mxu1 }
 0x370   :  { %1612 = vst.msk [vmem:[%s2605_s7 + $0xe0] sm:$0xff] %vm1583_vm0, %v1441_v40  ;;  %v1444_v62 = vadd.f32 %v2276_v42, %v1443_v44 }
 0x371   :  { %1615 = vst.msk [vmem:[%s2605_s7 + $0xf8] sm:$0xff] %vm1583_vm0, %v1452_v43 }
 0x372   :  { %1613 = vst.msk [vmem:[%s2605_s7 + $0xe8] sm:$0xff] %vm1583_vm0, %v1444_v62 }
 0x37c   :  { %v1899_v45 = vpop.f32.mrb[96].mxu1 }
 0x37d   :  { %v1465_v46 = vadd.f32 %v1899_v45, %v2276_v42  ;;  %v1456_v47 = vpop.f32.mrb[97].mxu1 }
 0x37e   :  { %v1457_v48 = vadd.f32 %v2276_v42, %v1456_v47  ;;  %v1900_v38 = vpop.f32.mrb[98].mxu1 }
 0x37f   :  { %1618 = vst.msk [vmem:[%s2605_s7 + $0x110] sm:$0xff] %vm1583_vm0, %v1465_v46  ;;  %v1468_v49 = vadd.f32 %v1900_v38, %v2276_v42  ;;  %v1459_v50 = vpop.f32.mrb[99].mxu1 }
 0x380   :  { %1616 = vst.msk [vmem:[%s2605_s7 + $0x100] sm:$0xff] %vm1583_vm0, %v1457_v48  ;;  %v1460_v51 = vadd.f32 %v2276_v42, %v1459_v50 }
 0x381   :  { %1619 = vst.msk [vmem:[%s2605_s7 + $0x118] sm:$0xff] %vm1583_vm0, %v1468_v49 }
 0x382   :  { %1617 = vst.msk [vmem:[%s2605_s7 + $0x108] sm:$0xff] %vm1583_vm0, %v1460_v51 }
 0x38c   :  { %v1903_v52 = vpop.f32.mrb[100].mxu1 }
 0x38d   :  { %v1481_v53 = vadd.f32 %v1903_v52, %v2276_v42  ;;  %v1472_v54 = vpop.f32.mrb[101].mxu1 }
 0x38e   :  { %v1473_v55 = vadd.f32 %v2276_v42, %v1472_v54  ;;  %v1904_v56 = vpop.f32.mrb[102].mxu1 }
 0x38f   :  { %1622 = vst.msk [vmem:[%s2605_s7 + $0x130] sm:$0xff] %vm1583_vm0, %v1481_v53  ;;  %v1484_v57 = vadd.f32 %v1904_v56, %v2276_v42  ;;  %v1475_v58 = vpop.f32.mrb[103].mxu1 }
 0x390   :  { %1620 = vst.msk [vmem:[%s2605_s7 + $0x120] sm:$0xff] %vm1583_vm0, %v1473_v55  ;;  %v1476_v59 = vadd.f32 %v2276_v42, %v1475_v58 }
 0x391   :  { %1623 = vst.msk [vmem:[%s2605_s7 + $0x138] sm:$0xff] %vm1583_vm0, %v1484_v57 }
 0x392   :  { %1621 = vst.msk [vmem:[%s2605_s7 + $0x128] sm:$0xff] %vm1583_vm0, %v1476_v59 }
 0x39c   :  { %v1907_v60 = vpop.f32.mrb[104].mxu1 }
 0x39d   :  { %v1497_v61 = vadd.f32 %v1907_v60, %v2276_v42  ;;  %v1488_v63 = vpop.f32.mrb[105].mxu1 }
 0x39e   :  { %v1489_v0 = vadd.f32 %v2276_v42, %v1488_v63  ;;  %v1908_v1 = vpop.f32.mrb[106].mxu1 }
 0x39f   :  { %1626 = vst.msk [vmem:[%s2605_s7 + $0x150] sm:$0xff] %vm1583_vm0, %v1497_v61  ;;  %v1500_v2 = vadd.f32 %v1908_v1, %v2276_v42  ;;  %v1491_v3 = vpop.f32.mrb[107].mxu1 }
 0x3a0   :  { %1624 = vst.msk [vmem:[%s2605_s7 + $0x140] sm:$0xff] %vm1583_vm0, %v1489_v0  ;;  %v1492_v4 = vadd.f32 %v2276_v42, %v1491_v3 }
 0x3a1   :  { %1627 = vst.msk [vmem:[%s2605_s7 + $0x158] sm:$0xff] %vm1583_vm0, %v1500_v2 }
 0x3a2   :  { %1625 = vst.msk [vmem:[%s2605_s7 + $0x148] sm:$0xff] %vm1583_vm0, %v1492_v4 }
 0x3ac   :  { %v1911_v5 = vpop.f32.mrb[108].mxu1 }
 0x3ad   :  { %v1513_v6 = vadd.f32 %v1911_v5, %v2276_v42  ;;  %v1504_v7 = vpop.f32.mrb[109].mxu1 }
 0x3ae   :  { %v1505_v8 = vadd.f32 %v2276_v42, %v1504_v7  ;;  %v1912_v9 = vpop.f32.mrb[110].mxu1 }
 0x3af   :  { %1630 = vst.msk [vmem:[%s2605_s7 + $0x170] sm:$0xff] %vm1583_vm0, %v1513_v6  ;;  %v1516_v10 = vadd.f32 %v1912_v9, %v2276_v42  ;;  %v1507_v11 = vpop.f32.mrb[111].mxu1 }
 0x3b0   :  { %1628 = vst.msk [vmem:[%s2605_s7 + $0x160] sm:$0xff] %vm1583_vm0, %v1505_v8  ;;  %v1508_v12 = vadd.f32 %v2276_v42, %v1507_v11 }
 0x3b1   :  { %1631 = vst.msk [vmem:[%s2605_s7 + $0x178] sm:$0xff] %vm1583_vm0, %v1516_v10 }
 0x3b2   :  { %1629 = vst.msk [vmem:[%s2605_s7 + $0x168] sm:$0xff] %vm1583_vm0, %v1508_v12 }
 0x3bc   :  { %v1915_v13 = vpop.f32.mrb[112].mxu1 }
 0x3bd   :  { %v1529_v14 = vadd.f32 %v1915_v13, %v2276_v42  ;;  %v1520_v15 = vpop.f32.mrb[113].mxu1 }
 0x3be   :  { %v1521_v16 = vadd.f32 %v2276_v42, %v1520_v15  ;;  %v1916_v17 = vpop.f32.mrb[114].mxu1 }
 0x3bf   :  { %1634 = vst.msk [vmem:[%s2605_s7 + $0x190] sm:$0xff] %vm1583_vm0, %v1529_v14  ;;  %v1532_v18 = vadd.f32 %v1916_v17, %v2276_v42  ;;  %v1523_v19 = vpop.f32.mrb[115].mxu1 }
 0x3c0   :  { %1632 = vst.msk [vmem:[%s2605_s7 + $0x180] sm:$0xff] %vm1583_vm0, %v1521_v16  ;;  %v1524_v20 = vadd.f32 %v2276_v42, %v1523_v19 }
 0x3c1   :  { %1635 = vst.msk [vmem:[%s2605_s7 + $0x198] sm:$0xff] %vm1583_vm0, %v1532_v18 }
 0x3c2   :  { %1633 = vst.msk [vmem:[%s2605_s7 + $0x188] sm:$0xff] %vm1583_vm0, %v1524_v20 }
 0x3cc   :  { %v1919_v21 = vpop.f32.mrb[116].mxu1 }
 0x3cd   :  { %v1545_v22 = vadd.f32 %v1919_v21, %v2276_v42  ;;  %v1536_v23 = vpop.f32.mrb[117].mxu1 }
 0x3ce   :  { %v1537_v24 = vadd.f32 %v2276_v42, %v1536_v23  ;;  %v1920_v25 = vpop.f32.mrb[118].mxu1 }
 0x3cf   :  { %1638 = vst.msk [vmem:[%s2605_s7 + $0x1b0] sm:$0xff] %vm1583_vm0, %v1545_v22  ;;  %v1548_v26 = vadd.f32 %v1920_v25, %v2276_v42  ;;  %v1539_v27 = vpop.f32.mrb[119].mxu1 }
 0x3d0   :  { %1636 = vst.msk [vmem:[%s2605_s7 + $0x1a0] sm:$0xff] %vm1583_vm0, %v1537_v24  ;;  %v1540_v28 = vadd.f32 %v2276_v42, %v1539_v27 }
 0x3d1   :  { %1639 = vst.msk [vmem:[%s2605_s7 + $0x1b8] sm:$0xff] %vm1583_vm0, %v1548_v26 }
 0x3d2   :  { %1637 = vst.msk [vmem:[%s2605_s7 + $0x1a8] sm:$0xff] %vm1583_vm0, %v1540_v28 }
 0x3dc   :  { %v1923_v29 = vpop.f32.mrb[120].mxu1 }
 0x3dd   :  { %v1561_v30 = vadd.f32 %v1923_v29, %v2276_v42  ;;  %v1552_v31 = vpop.f32.mrb[121].mxu1 }
 0x3de   :  { %v1553_v32 = vadd.f32 %v2276_v42, %v1552_v31  ;;  %v1924_v33 = vpop.f32.mrb[122].mxu1 }
 0x3df   :  { %1642 = vst.msk [vmem:[%s2605_s7 + $0x1d0] sm:$0xff] %vm1583_vm0, %v1561_v30  ;;  %v1564_v34 = vadd.f32 %v1924_v33, %v2276_v42  ;;  %v1555_v35 = vpop.f32.mrb[123].mxu1 }
 0x3e0   :  { %1640 = vst.msk [vmem:[%s2605_s7 + $0x1c0] sm:$0xff] %vm1583_vm0, %v1553_v32  ;;  %v1556_v36 = vadd.f32 %v2276_v42, %v1555_v35 }
 0x3e1   :  { %1643 = vst.msk [vmem:[%s2605_s7 + $0x1d8] sm:$0xff] %vm1583_vm0, %v1564_v34 }
 0x3e2   :  { %1641 = vst.msk [vmem:[%s2605_s7 + $0x1c8] sm:$0xff] %vm1583_vm0, %v1556_v36 }
 0x3ec   :  { %v1927_v37 = vpop.f32.mrb[124].mxu1 }
 0x3ed   :  { %v1577_v39 = vadd.f32 %v1927_v37, %v2276_v42  ;;  %v1568_v40 = vpop.f32.mrb[125].mxu1 }
 0x3ee   :  { %v1569_v41 = vadd.f32 %v2276_v42, %v1568_v40  ;;  %v1928_v43 = vpop.f32.mrb[126].mxu1 }
 0x3ef   :  { %1646 = vst.msk [vmem:[%s2605_s7 + $0x1f0] sm:$0xff] %vm1583_vm0, %v1577_v39  ;;  %v1580_v44 = vadd.f32 %v1928_v43, %v2276_v42  ;;  %v1571_v62 = vpop.f32.mrb[127].mxu1 }
 0x3f0   :  { %1644 = vst.msk [vmem:[%s2605_s7 + $0x1e0] sm:$0xff] %vm1583_vm0, %v1569_v41  ;;  %v1572_v45 = vadd.f32 %v2276_v42, %v1571_v62 }
 0x3f1   :  { %1647 = vst.msk [vmem:[%s2605_s7 + $0x1f8] sm:$0xff] %vm1583_vm0, %v1580_v44 }
 0x3f2   :  { %1645 = vst.msk [vmem:[%s2605_s7 + $0x1e8] sm:$0xff] %vm1583_vm0, %v1572_v45 }
 0x3f3   :  { %1652 = vsyncpa [#allocation3], 1 }
 0x3f4   :  { %1653 = vsyncpa [#allocation5], 1 }

</bundles_post_ra>
